<compile_context>
chip_gen: v6e
topology: v6e:2x2x1
jax: 0.10.0
libtpu: 0.0.40
codegen_flags: <defaults>
</compile_context>

<pallas_src>
import functools

import jax
import jax.numpy as jnp
from jax.experimental import pallas as pl
from jax.experimental.pallas import tpu as pltpu

_LANE = 128
_SUBLANE = 8


def _round_up(n, m):
    return ((n + m - 1) // m) * m


def _activation(h, kind):
    if kind == "ReLU":
        return jnp.maximum(h, 0.0)
    elif kind == "LeakyReLU":
        # PyTorch default negative_slope = 0.01
        return jnp.where(h >= 0.0, h, 0.01 * h)
    else:  # Tanh
        return jnp.tanh(h)


def _encoder_kernel(x_ref,
                    w0_ref, b0_ref,
                    w1_ref, b1_ref,
                    w2_ref, b2_ref,
                    w3_ref, b3_ref,
                    o_ref,
                    *, activation):
    """Fused 4-layer MLP on one batch tile.

    x arrives f32 (single HBM read) and is cast to bf16 in VMEM right before
    the first dot; weights are bf16 (MXU-native); all matmuls accumulate in
    f32 via preferred_element_type; biases/activations in f32.
    """
    x = x_ref[...].astype(jnp.bfloat16)
    h = jnp.dot(x, w0_ref[...], preferred_element_type=jnp.float32)
    h = _activation(h + b0_ref[...], activation)

    h = jnp.dot(h.astype(jnp.bfloat16), w1_ref[...],
                preferred_element_type=jnp.float32)
    h = _activation(h + b1_ref[...], activation)

    h = jnp.dot(h.astype(jnp.bfloat16), w2_ref[...],
                preferred_element_type=jnp.float32)
    h = _activation(h + b2_ref[...], activation)

    h = jnp.dot(h.astype(jnp.bfloat16), w3_ref[...],
                preferred_element_type=jnp.float32) + b3_ref[...]

    o_ref[...] = h.astype(o_ref.dtype)


def prepare_params(params):
    """One-time weight prep, hoisted out of the hot forward path.

    * every layer's OUTPUT width is zero-padded up to a multiple of 128 so all
      intermediates and the final store are lane-dense (no masked vst),
    * the next layer's INPUT rows are zero-padded to match (zero rows -> the
      padded activation columns contribute nothing, result is exact),
    * the layer-0 contraction dim (input_size) is NOT padded,
    * weights cast to bf16, biases reshaped to (1, out) f32.

    params: list of (W, b) with W laid out (in, out), i.e. torch W.T.
    Returns (flat_prepared_list, latent_dim, padded_out_dim).
    """
    latent_dim = params[-1][0].shape[1]
    prepared = []
    prev_out_pad = params[0][0].shape[0]          # layer-0 input dim, unpadded
    for (w, b) in params:
        din, dout = w.shape
        dout_pad = _round_up(dout, _LANE)
        w = jnp.pad(w, ((0, prev_out_pad - din), (0, dout_pad - dout)))
        b = jnp.pad(b, (0, dout_pad - dout))
        prepared.append(w.astype(jnp.bfloat16))
        prepared.append(b.reshape(1, -1).astype(jnp.float32))
        prev_out_pad = dout_pad
    return prepared, latent_dim, prev_out_pad


def encoder_forward(x, prepared, latent_dim, out_pad, activation="ReLU",
                    block_b=1024, vmem_budget_bytes=40 << 20,
                    out_dtype=jnp.float32):
    """x: (B, input_size) float32.  prepared/latent_dim/out_pad from
    prepare_params().  Returns (B, latent_dim) in out_dtype."""
    B, in_dim = x.shape

    weight_bytes = sum(int(a.size) * a.dtype.itemsize for a in prepared)
    max_width = max(int(a.shape[-1]) for a in prepared[0::2])

    # Batch tile: multiple of 8 sublanes, capped by block_b and by the VMEM
    # budget (x and out tiles are double-buffered by the pipeline; add some
    # slack for the f32/bf16 intermediates inside the kernel).
    per_row_bytes = 10 * in_dim + 8 * out_pad + 12 * max_width
    avail = max(vmem_budget_bytes - 2 * weight_bytes - (2 << 20),
                per_row_bytes * _SUBLANE)
    tb_cap = max(_SUBLANE, (avail // per_row_bytes) // _SUBLANE * _SUBLANE)
    TB = _round_up(min(block_b, B), _SUBLANE)
    TB = max(_SUBLANE, min(TB, tb_cap))

    grid = (pl.cdiv(B, TB),)          # ragged last tile handled by Pallas

    flops = sum(2 * B * int(w.shape[0]) * int(w.shape[1])
                for w in prepared[0::2])
    if activation in ("ReLU", "LeakyReLU"):
        transcendentals = 0
    else:  # Tanh on the 3 hidden layers
        transcendentals = B * sum(int(w.shape[1]) for w in prepared[0:6:2])
    bytes_accessed = (int(x.size) * 4 + weight_bytes
                      + B * out_pad * jnp.dtype(out_dtype).itemsize)
    cost = pl.CostEstimate(flops=flops, transcendentals=transcendentals,
                           bytes_accessed=bytes_accessed)

    kernel = functools.partial(_encoder_kernel, activation=activation)

    def _const_specs(single_buffer):
        specs = []
        for a in prepared:
            idx = (lambda i, _nd=a.ndim: (0,) * _nd)
            if single_buffer:
                specs.append(pl.BlockSpec(a.shape, idx,
                                          pipeline_mode=pl.Buffered(1)))
            else:
                specs.append(pl.BlockSpec(a.shape, idx))
        return specs

    def build(single_buffer):
        # x / out are batch-tiled; weights & biases use constant index_maps so
        # they are fetched from HBM once and stay VMEM-resident across tiles.
        in_specs = [pl.BlockSpec((TB, in_dim), lambda i: (i, 0))]
        in_specs += _const_specs(single_buffer)
        out_specs = pl.BlockSpec((TB, out_pad), lambda i: (i, 0))
        return pl.pallas_call(
            kernel,
            out_shape=jax.ShapeDtypeStruct((B, out_pad), out_dtype),
            grid_spec=pltpu.PrefetchScalarGridSpec(
                num_scalar_prefetch=0,
                grid=grid,
                in_specs=in_specs,
                out_specs=out_specs,
            ),
            compiler_params=pltpu.CompilerParams(
                dimension_semantics=("parallel",),   # batch tiles -> megacore
                vmem_limit_bytes=int(vmem_budget_bytes),
            ),
            cost_estimate=cost,
        )

    try:
        out_padded = build(single_buffer=True)(x, *prepared)
    except Exception:
        # Older JAX / lowering without single-buffer support: default 2-deep.
        out_padded = build(single_buffer=False)(x, *prepared)

    # TODO(synk): a lane-aware consumer could take the padded (B, out_pad)
    # block directly and avoid this small trailing slice op.
    return out_padded[:, :latent_dim]


def init_params(key, input_size, hidden_dims, latent_dim):
    """PyTorch-style uniform(+/- 1/sqrt(fan_in)) init, stored as (in, out)."""
    dims = [input_size] + list(hidden_dims) + [latent_dim]
    params = []
    for i in range(len(dims) - 1):
        key, kw, kb = jax.random.split(key, 3)
        fan_in, fan_out = dims[i], dims[i + 1]
        bound = 1.0 / jnp.sqrt(fan_in)
        w = jax.random.uniform(kw, (fan_in, fan_out), jnp.float32, -bound, bound)
        b = jax.random.uniform(kb, (fan_out,), jnp.float32, -bound, bound)
        params.append((w, b))
    return params


def encoder_reference(x, params, activation="ReLU"):
    """Pure-JAX f32 reference of the PyTorch forward pass."""
    h = x
    n = len(params)
    for i, (w, b) in enumerate(params):
        h = h @ w + b
        if i < n - 1:
            h = _activation(h, activation)
    return h


if __name__ == "__main__":
    # hparams consistent with the module: 4 linear layers + activation choice
    hparams = {
        "activation": "ReLU",
        "n_hidden_0": 128,
        "n_hidden_1": 64,
        "n_hidden_2": 32,
        "latent_dim": 20,
    }
    input_size = 28 * 28   # module default
    latent_dim = hparams["latent_dim"]
    batch = 10             # not a multiple of 8 -> exercises the ragged tile

    key = jax.random.PRNGKey(0)
    key, kx = jax.random.split(key)
    x = jax.random.normal(kx, (batch, input_size), jnp.float32)

    params = init_params(
        key, input_size,
        (hparams["n_hidden_0"], hparams["n_hidden_1"], hparams["n_hidden_2"]),
        latent_dim,
    )

    # One-time weight prep (out of the hot path).
    prepared, lat, out_pad = prepare_params(params)

    # block_b=8 -> TB=8, grid=(2,) with a ragged last tile: exercises the
    # multi-tile + clipped-tail path at tiny shapes.
    out = encoder_forward(x, prepared, lat, out_pad,
                          activation=hparams["activation"], block_b=8)
    out = jax.block_until_ready(out)

    ref = encoder_reference(x, params, activation=hparams["activation"])
    assert out.shape == (batch, latent_dim), out.shape
    # bf16 weights/activations with f32 accumulation -> loosened tolerance
    # vs the pure-f32 reference.
    assert jnp.allclose(out, ref, atol=3e-2, rtol=3e-2), "mismatch vs reference"

    print("KERNEL_OK")
</pallas_src>

<mosaic_0001>
module attributes {stable_mosaic.version = 11 : i64} {
  func.func @_encoder_kernel(%arg0: i32, %arg1: memref<8x784xf32, #tpu.memory_space<vmem>>, %arg2: memref<784x128xbf16, #tpu.memory_space<vmem>>, %arg3: memref<1x128xf32, #tpu.memory_space<vmem>>, %arg4: memref<128x128xbf16, #tpu.memory_space<vmem>>, %arg5: memref<1x128xf32, #tpu.memory_space<vmem>>, %arg6: memref<128x128xbf16, #tpu.memory_space<vmem>>, %arg7: memref<1x128xf32, #tpu.memory_space<vmem>>, %arg8: memref<128x128xbf16, #tpu.memory_space<vmem>>, %arg9: memref<1x128xf32, #tpu.memory_space<vmem>>, %arg10: memref<8x128xf32, #tpu.memory_space<vmem>>) attributes {dimension_semantics = [#tpu.dimension_semantics<parallel>], iteration_bounds = array<i64: 2>, scalar_prefetch = 0 : i64, scratch_operands = 0 : i64, tpu.core_type = #tpu.core_type<tc>, window_params = [{transform_indices = @transform_0, window_bounds = array<i64: 8, 784>}, {pipeline_mode = #tpu.pipeline_mode<synchronous>, transform_indices = @transform_1, window_bounds = array<i64: 784, 128>}, {pipeline_mode = #tpu.pipeline_mode<synchronous>, transform_indices = @transform_2, window_bounds = array<i64: 1, 128>}, {pipeline_mode = #tpu.pipeline_mode<synchronous>, transform_indices = @transform_3, window_bounds = array<i64: 128, 128>}, {pipeline_mode = #tpu.pipeline_mode<synchronous>, transform_indices = @transform_4, window_bounds = array<i64: 1, 128>}, {pipeline_mode = #tpu.pipeline_mode<synchronous>, transform_indices = @transform_5, window_bounds = array<i64: 128, 128>}, {pipeline_mode = #tpu.pipeline_mode<synchronous>, transform_indices = @transform_6, window_bounds = array<i64: 1, 128>}, {pipeline_mode = #tpu.pipeline_mode<synchronous>, transform_indices = @transform_7, window_bounds = array<i64: 128, 128>}, {pipeline_mode = #tpu.pipeline_mode<synchronous>, transform_indices = @transform_8, window_bounds = array<i64: 1, 128>}, {transform_indices = @transform_9, window_bounds = array<i64: 8, 128>}]} {
    %c0 = arith.constant 0 : index
    %c0_0 = arith.constant 0 : index
    %0 = vector.load %arg1[%c0, %c0_0] : memref<8x784xf32, #tpu.memory_space<vmem>>, vector<8x784xf32>
    %1 = arith.truncf %0 : vector<8x784xf32> to vector<8x784xbf16>
    %c0_1 = arith.constant 0 : index
    %c0_2 = arith.constant 0 : index
    %2 = vector.load %arg2[%c0_1, %c0_2] : memref<784x128xbf16, #tpu.memory_space<vmem>>, vector<784x128xbf16>
    %cst = arith.constant dense<0.000000e+00> : vector<8x128xf32>
    %3 = tpu.matmul %1, %2, %cst {dimension_numbers = #tpu.dot_dimension_numbers<[1], [0], [0], [1], [0, 0, 1, 1], [], []>} : vector<8x784xbf16>, vector<784x128xbf16>, vector<8x128xf32> -> vector<8x128xf32>
    %c0_3 = arith.constant 0 : index
    %c0_4 = arith.constant 0 : index
    %4 = vector.load %arg3[%c0_3, %c0_4] : memref<1x128xf32, #tpu.memory_space<vmem>>, vector<1x128xf32>
    %5 = vector.broadcast %4 : vector<1x128xf32> to vector<8x128xf32>
    %6 = arith.addf %3, %5 : vector<8x128xf32>
    %cst_5 = arith.constant 0.000000e+00 : f32
    %7 = vector.broadcast %cst_5 : f32 to vector<8x128xf32>
    %8 = arith.maximumf %6, %7 : vector<8x128xf32>
    %9 = arith.truncf %8 : vector<8x128xf32> to vector<8x128xbf16>
    %c0_6 = arith.constant 0 : index
    %c0_7 = arith.constant 0 : index
    %10 = vector.load %arg4[%c0_6, %c0_7] : memref<128x128xbf16, #tpu.memory_space<vmem>>, vector<128x128xbf16>
    %cst_8 = arith.constant dense<0.000000e+00> : vector<8x128xf32>
    %11 = tpu.matmul %9, %10, %cst_8 {dimension_numbers = #tpu.dot_dimension_numbers<[1], [0], [0], [1], [0, 0, 1, 1], [], []>} : vector<8x128xbf16>, vector<128x128xbf16>, vector<8x128xf32> -> vector<8x128xf32>
    %c0_9 = arith.constant 0 : index
    %c0_10 = arith.constant 0 : index
    %12 = vector.load %arg5[%c0_9, %c0_10] : memref<1x128xf32, #tpu.memory_space<vmem>>, vector<1x128xf32>
    %13 = vector.broadcast %12 : vector<1x128xf32> to vector<8x128xf32>
    %14 = arith.addf %11, %13 : vector<8x128xf32>
    %cst_11 = arith.constant 0.000000e+00 : f32
    %15 = vector.broadcast %cst_11 : f32 to vector<8x128xf32>
    %16 = arith.maximumf %14, %15 : vector<8x128xf32>
    %17 = arith.truncf %16 : vector<8x128xf32> to vector<8x128xbf16>
    %c0_12 = arith.constant 0 : index
    %c0_13 = arith.constant 0 : index
    %18 = vector.load %arg6[%c0_12, %c0_13] : memref<128x128xbf16, #tpu.memory_space<vmem>>, vector<128x128xbf16>
    %cst_14 = arith.constant dense<0.000000e+00> : vector<8x128xf32>
    %19 = tpu.matmul %17, %18, %cst_14 {dimension_numbers = #tpu.dot_dimension_numbers<[1], [0], [0], [1], [0, 0, 1, 1], [], []>} : vector<8x128xbf16>, vector<128x128xbf16>, vector<8x128xf32> -> vector<8x128xf32>
    %c0_15 = arith.constant 0 : index
    %c0_16 = arith.constant 0 : index
    %20 = vector.load %arg7[%c0_15, %c0_16] : memref<1x128xf32, #tpu.memory_space<vmem>>, vector<1x128xf32>
    %21 = vector.broadcast %20 : vector<1x128xf32> to vector<8x128xf32>
    %22 = arith.addf %19, %21 : vector<8x128xf32>
    %cst_17 = arith.constant 0.000000e+00 : f32
    %23 = vector.broadcast %cst_17 : f32 to vector<8x128xf32>
    %24 = arith.maximumf %22, %23 : vector<8x128xf32>
    %25 = arith.truncf %24 : vector<8x128xf32> to vector<8x128xbf16>
    %c0_18 = arith.constant 0 : index
    %c0_19 = arith.constant 0 : index
    %26 = vector.load %arg8[%c0_18, %c0_19] : memref<128x128xbf16, #tpu.memory_space<vmem>>, vector<128x128xbf16>
    %cst_20 = arith.constant dense<0.000000e+00> : vector<8x128xf32>
    %27 = tpu.matmul %25, %26, %cst_20 {dimension_numbers = #tpu.dot_dimension_numbers<[1], [0], [0], [1], [0, 0, 1, 1], [], []>} : vector<8x128xbf16>, vector<128x128xbf16>, vector<8x128xf32> -> vector<8x128xf32>
    %c0_21 = arith.constant 0 : index
    %c0_22 = arith.constant 0 : index
    %28 = vector.load %arg9[%c0_21, %c0_22] : memref<1x128xf32, #tpu.memory_space<vmem>>, vector<1x128xf32>
    %29 = vector.broadcast %28 : vector<1x128xf32> to vector<8x128xf32>
    %30 = arith.addf %27, %29 : vector<8x128xf32>
    %c0_23 = arith.constant 0 : index
    %c0_24 = arith.constant 0 : index
    %31 = vector.load %arg10[%c0_23, %c0_24] : memref<8x128xf32, #tpu.memory_space<vmem>>, vector<8x128xf32>
    tpu.vector_store %arg10[%c0_23, %c0_24], %30 {strides = array<i32>} : memref<8x128xf32, #tpu.memory_space<vmem>>, vector<8x128xf32>,
    return
  }
  func.func @transform_0(%arg0: i32) -> (i32, i32) {
    %c0_i32 = arith.constant 0 : i32
    %c0_i32_0 = arith.constant 0 : i32
    return %arg0, %c0_i32 : i32, i32
  }
  func.func @transform_1(%arg0: i32) -> (i32, i32) {
    %c0_i32 = arith.constant 0 : i32
    %c0_i32_0 = arith.constant 0 : i32
    %c0_i32_1 = arith.constant 0 : i32
    return %c0_i32, %c0_i32_0 : i32, i32
  }
  func.func @transform_2(%arg0: i32) -> (i32, i32) {
    %c0_i32 = arith.constant 0 : i32
    %c0_i32_0 = arith.constant 0 : i32
    %c0_i32_1 = arith.constant 0 : i32
    return %c0_i32, %c0_i32_0 : i32, i32
  }
  func.func @transform_3(%arg0: i32) -> (i32, i32) {
    %c0_i32 = arith.constant 0 : i32
    %c0_i32_0 = arith.constant 0 : i32
    %c0_i32_1 = arith.constant 0 : i32
    return %c0_i32, %c0_i32_0 : i32, i32
  }
  func.func @transform_4(%arg0: i32) -> (i32, i32) {
    %c0_i32 = arith.constant 0 : i32
    %c0_i32_0 = arith.constant 0 : i32
    %c0_i32_1 = arith.constant 0 : i32
    return %c0_i32, %c0_i32_0 : i32, i32
  }
  func.func @transform_5(%arg0: i32) -> (i32, i32) {
    %c0_i32 = arith.constant 0 : i32
    %c0_i32_0 = arith.constant 0 : i32
    %c0_i32_1 = arith.constant 0 : i32
    return %c0_i32, %c0_i32_0 : i32, i32
  }
  func.func @transform_6(%arg0: i32) -> (i32, i32) {
    %c0_i32 = arith.constant 0 : i32
    %c0_i32_0 = arith.constant 0 : i32
    %c0_i32_1 = arith.constant 0 : i32
    return %c0_i32, %c0_i32_0 : i32, i32
  }
  func.func @transform_7(%arg0: i32) -> (i32, i32) {
    %c0_i32 = arith.constant 0 : i32
    %c0_i32_0 = arith.constant 0 : i32
    %c0_i32_1 = arith.constant 0 : i32
    return %c0_i32, %c0_i32_0 : i32, i32
  }
  func.func @transform_8(%arg0: i32) -> (i32, i32) {
    %c0_i32 = arith.constant 0 : i32
    %c0_i32_0 = arith.constant 0 : i32
    %c0_i32_1 = arith.constant 0 : i32
    return %c0_i32, %c0_i32_0 : i32, i32
  }
  func.func @transform_9(%arg0: i32) -> (i32, i32) {
    %c0_i32 = arith.constant 0 : i32
    %c0_i32_0 = arith.constant 0 : i32
    return %arg0, %c0_i32 : i32, i32
  }
}

module attributes {stable_mosaic.version = 11 : i64} {
  func.func @_encoder_kernel(%arg0: i32, %arg1: memref<8x784xf32, #tpu.memory_space<vmem>>, %arg2: memref<784x128xbf16, #tpu.memory_space<vmem>>, %arg3: memref<1x128xf32, #tpu.memory_space<vmem>>, %arg4: memref<128x128xbf16, #tpu.memory_space<vmem>>, %arg5: memref<1x128xf32, #tpu.memory_space<vmem>>, %arg6: memref<128x128xbf16, #tpu.memory_space<vmem>>, %arg7: memref<1x128xf32, #tpu.memory_space<vmem>>, %arg8: memref<128x128xbf16, #tpu.memory_space<vmem>>, %arg9: memref<1x128xf32, #tpu.memory_space<vmem>>, %arg10: memref<8x128xf32, #tpu.memory_space<vmem>>) attributes {dimension_semantics = [#tpu.dimension_semantics<parallel>], iteration_bounds = array<i64: 2>, scalar_prefetch = 0 : i64, scratch_operands = 0 : i64, tpu.core_type = #tpu.core_type<tc>, window_params = [{transform_indices = @transform_0, window_bounds = array<i64: 8, 784>}, {pipeline_mode = #tpu.pipeline_mode<synchronous>, transform_indices = @transform_1, window_bounds = array<i64: 784, 128>}, {pipeline_mode = #tpu.pipeline_mode<synchronous>, transform_indices = @transform_2, window_bounds = array<i64: 1, 128>}, {pipeline_mode = #tpu.pipeline_mode<synchronous>, transform_indices = @transform_3, window_bounds = array<i64: 128, 128>}, {pipeline_mode = #tpu.pipeline_mode<synchronous>, transform_indices = @transform_4, window_bounds = array<i64: 1, 128>}, {pipeline_mode = #tpu.pipeline_mode<synchronous>, transform_indices = @transform_5, window_bounds = array<i64: 128, 128>}, {pipeline_mode = #tpu.pipeline_mode<synchronous>, transform_indices = @transform_6, window_bounds = array<i64: 1, 128>}, {pipeline_mode = #tpu.pipeline_mode<synchronous>, transform_indices = @transform_7, window_bounds = array<i64: 128, 128>}, {pipeline_mode = #tpu.pipeline_mode<synchronous>, transform_indices = @transform_8, window_bounds = array<i64: 1, 128>}, {transform_indices = @transform_9, window_bounds = array<i64: 8, 128>}]} {
    %c0 = arith.constant 0 : index
    %c0_0 = arith.constant 0 : index
    %0 = vector.load %arg1[%c0, %c0_0] : memref<8x784xf32, #tpu.memory_space<vmem>>, vector<8x784xf32>
    %1 = arith.truncf %0 : vector<8x784xf32> to vector<8x784xbf16>
    %c0_1 = arith.constant 0 : index
    %c0_2 = arith.constant 0 : index
    %2 = vector.load %arg2[%c0_1, %c0_2] : memref<784x128xbf16, #tpu.memory_space<vmem>>, vector<784x128xbf16>
    %cst = arith.constant dense<0.000000e+00> : vector<8x128xf32>
    %3 = tpu.matmul %1, %2, %cst {dimension_numbers = #tpu.dot_dimension_numbers<[1], [0], [0], [1], [0, 0, 1, 1], [], []>} : vector<8x784xbf16>, vector<784x128xbf16>, vector<8x128xf32> -> vector<8x128xf32>
    %c0_3 = arith.constant 0 : index
    %c0_4 = arith.constant 0 : index
    %4 = vector.load %arg3[%c0_3, %c0_4] : memref<1x128xf32, #tpu.memory_space<vmem>>, vector<1x128xf32>
    %5 = vector.broadcast %4 : vector<1x128xf32> to vector<8x128xf32>
    %6 = arith.addf %3, %5 : vector<8x128xf32>
    %cst_5 = arith.constant 0.000000e+00 : f32
    %7 = vector.broadcast %cst_5 : f32 to vector<8x128xf32>
    %8 = arith.maximumf %6, %7 : vector<8x128xf32>
    %9 = arith.truncf %8 : vector<8x128xf32> to vector<8x128xbf16>
    %c0_6 = arith.constant 0 : index
    %c0_7 = arith.constant 0 : index
    %10 = vector.load %arg4[%c0_6, %c0_7] : memref<128x128xbf16, #tpu.memory_space<vmem>>, vector<128x128xbf16>
    %cst_8 = arith.constant dense<0.000000e+00> : vector<8x128xf32>
    %11 = tpu.matmul %9, %10, %cst_8 {dimension_numbers = #tpu.dot_dimension_numbers<[1], [0], [0], [1], [0, 0, 1, 1], [], []>} : vector<8x128xbf16>, vector<128x128xbf16>, vector<8x128xf32> -> vector<8x128xf32>
    %c0_9 = arith.constant 0 : index
    %c0_10 = arith.constant 0 : index
    %12 = vector.load %arg5[%c0_9, %c0_10] : memref<1x128xf32, #tpu.memory_space<vmem>>, vector<1x128xf32>
    %13 = vector.broadcast %12 : vector<1x128xf32> to vector<8x128xf32>
    %14 = arith.addf %11, %13 : vector<8x128xf32>
    %cst_11 = arith.constant 0.000000e+00 : f32
    %15 = vector.broadcast %cst_11 : f32 to vector<8x128xf32>
    %16 = arith.maximumf %14, %15 : vector<8x128xf32>
    %17 = arith.truncf %16 : vector<8x128xf32> to vector<8x128xbf16>
    %c0_12 = arith.constant 0 : index
    %c0_13 = arith.constant 0 : index
    %18 = vector.load %arg6[%c0_12, %c0_13] : memref<128x128xbf16, #tpu.memory_space<vmem>>, vector<128x128xbf16>
    %cst_14 = arith.constant dense<0.000000e+00> : vector<8x128xf32>
    %19 = tpu.matmul %17, %18, %cst_14 {dimension_numbers = #tpu.dot_dimension_numbers<[1], [0], [0], [1], [0, 0, 1, 1], [], []>} : vector<8x128xbf16>, vector<128x128xbf16>, vector<8x128xf32> -> vector<8x128xf32>
    %c0_15 = arith.constant 0 : index
    %c0_16 = arith.constant 0 : index
    %20 = vector.load %arg7[%c0_15, %c0_16] : memref<1x128xf32, #tpu.memory_space<vmem>>, vector<1x128xf32>
    %21 = vector.broadcast %20 : vector<1x128xf32> to vector<8x128xf32>
    %22 = arith.addf %19, %21 : vector<8x128xf32>
    %cst_17 = arith.constant 0.000000e+00 : f32
    %23 = vector.broadcast %cst_17 : f32 to vector<8x128xf32>
    %24 = arith.maximumf %22, %23 : vector<8x128xf32>
    %25 = arith.truncf %24 : vector<8x128xf32> to vector<8x128xbf16>
    %c0_18 = arith.constant 0 : index
    %c0_19 = arith.constant 0 : index
    %26 = vector.load %arg8[%c0_18, %c0_19] : memref<128x128xbf16, #tpu.memory_space<vmem>>, vector<128x128xbf16>
    %cst_20 = arith.constant dense<0.000000e+00> : vector<8x128xf32>
    %27 = tpu.matmul %25, %26, %cst_20 {dimension_numbers = #tpu.dot_dimension_numbers<[1], [0], [0], [1], [0, 0, 1, 1], [], []>} : vector<8x128xbf16>, vector<128x128xbf16>, vector<8x128xf32> -> vector<8x128xf32>
    %c0_21 = arith.constant 0 : index
    %c0_22 = arith.constant 0 : index
    %28 = vector.load %arg9[%c0_21, %c0_22] : memref<1x128xf32, #tpu.memory_space<vmem>>, vector<1x128xf32>
    %29 = vector.broadcast %28 : vector<1x128xf32> to vector<8x128xf32>
    %30 = arith.addf %27, %29 : vector<8x128xf32>
    %c0_23 = arith.constant 0 : index
    %c0_24 = arith.constant 0 : index
    %31 = vector.load %arg10[%c0_23, %c0_24] : memref<8x128xf32, #tpu.memory_space<vmem>>, vector<8x128xf32>
    tpu.vector_store %arg10[%c0_23, %c0_24], %30 {strides = array<i32>} : memref<8x128xf32, #tpu.memory_space<vmem>>, vector<8x128xf32>,
    return
  }
  func.func @transform_0(%arg0: i32) -> (i32, i32) {
    %c0_i32 = arith.constant 0 : i32
    %c0_i32_0 = arith.constant 0 : i32
    return %arg0, %c0_i32 : i32, i32
  }
  func.func @transform_1(%arg0: i32) -> (i32, i32) {
    %c0_i32 = arith.constant 0 : i32
    %c0_i32_0 = arith.constant 0 : i32
    %c0_i32_1 = arith.constant 0 : i32
    return %c0_i32, %c0_i32_0 : i32, i32
  }
  func.func @transform_2(%arg0: i32) -> (i32, i32) {
    %c0_i32 = arith.constant 0 : i32
    %c0_i32_0 = arith.constant 0 : i32
    %c0_i32_1 = arith.constant 0 : i32
    return %c0_i32, %c0_i32_0 : i32, i32
  }
  func.func @transform_3(%arg0: i32) -> (i32, i32) {
    %c0_i32 = arith.constant 0 : i32
    %c0_i32_0 = arith.constant 0 : i32
    %c0_i32_1 = arith.constant 0 : i32
    return %c0_i32, %c0_i32_0 : i32, i32
  }
  func.func @transform_4(%arg0: i32) -> (i32, i32) {
    %c0_i32 = arith.constant 0 : i32
    %c0_i32_0 = arith.constant 0 : i32
    %c0_i32_1 = arith.constant 0 : i32
    return %c0_i32, %c0_i32_0 : i32, i32
  }
  func.func @transform_5(%arg0: i32) -> (i32, i32) {
    %c0_i32 = arith.constant 0 : i32
    %c0_i32_0 = arith.constant 0 : i32
    %c0_i32_1 = arith.constant 0 : i32
    return %c0_i32, %c0_i32_0 : i32, i32
  }
  func.func @transform_6(%arg0: i32) -> (i32, i32) {
    %c0_i32 = arith.constant 0 : i32
    %c0_i32_0 = arith.constant 0 : i32
    %c0_i32_1 = arith.constant 0 : i32
    return %c0_i32, %c0_i32_0 : i32, i32
  }
  func.func @transform_7(%arg0: i32) -> (i32, i32) {
    %c0_i32 = arith.constant 0 : i32
    %c0_i32_0 = arith.constant 0 : i32
    %c0_i32_1 = arith.constant 0 : i32
    return %c0_i32, %c0_i32_0 : i32, i32
  }
  func.func @transform_8(%arg0: i32) -> (i32, i32) {
    %c0_i32 = arith.constant 0 : i32
    %c0_i32_0 = arith.constant 0 : i32
    %c0_i32_1 = arith.constant 0 : i32
    return %c0_i32, %c0_i32_0 : i32, i32
  }
  func.func @transform_9(%arg0: i32) -> (i32, i32) {
    %c0_i32 = arith.constant 0 : i32
    %c0_i32_0 = arith.constant 0 : i32
    return %arg0, %c0_i32 : i32, i32
  }
}

</mosaic_0001>

<bundles_post_ra>
// kernel: tpu_custom_call.1
= control target key start
LH: loop header
LB: loop body
LE: loop exit
PB: predicated region body
PF: predicated region fallthrough
CT: control target
= control target key end

     0   :  { %s2413_s0 = inlined_call_operand.hbm [shape: f32[10,784], index: 0, kind: input, shape index: {}]   ;;  %s2414_s1 = inlined_call_operand.hbm [shape: bf16[784,128], index: 1, kind: input, shape index: {}]   ;;  %s2415_s2 = inlined_call_operand.vmem [shape: f32[1,128], index: 2, kind: input, shape index: {}]   ;;  %s2416_s3 = inlined_call_operand.hbm [shape: bf16[128,128], index: 3, kind: input, shape index: {}]   ;;  %s2417_s4 = inlined_call_operand.vmem [shape: f32[1,128], index: 4, kind: input, shape index: {}]   ;;  %s2418_s5 = inlined_call_operand.hbm [shape: bf16[128,128], index: 5, kind: input, shape index: {}]   ;;  %s2419_s6 = inlined_call_operand.vmem [shape: f32[1,128], index: 6, kind: input, shape index: {}]   ;;  %s2420_s7 = inlined_call_operand.hbm [shape: bf16[128,128], index: 7, kind: input, shape index: {}]   ;;  %s2421_s8 = inlined_call_operand.vmem [shape: f32[1,128], index: 8, kind: input, shape index: {}]   ;;  %s2422_s9 = inlined_call_operand.hbm [shape: f32[10,128], index: 9, kind: output, shape index: {}]  }
   0x1   :  { %2427 = sst [smem:[#allocation16_spill]] %s2414_s1 }
   0x2   :  { %2428 = sst [smem:[#allocation17_spill]] %s2416_s3 }
   0x3   :  { %2429 = sst [smem:[#allocation18_spill]] %s2418_s5 }
   0x4   :  { %2430 = sst [smem:[#allocation19_spill]] %s2420_s7 }
   0x5   :  { %14 = vsyncpa [#allocation3], 0 }
   0x6   :  { %16 = vsyncpa [#allocation3 + $0x1], 0 }
   0x7   :  { %17 = vsyncpa [#allocation6], 0 }
   0x8   :  { %18 = vsyncpa [#allocation9], 0 }
   0x9   :  { %19 = vsyncpa [#allocation4], 0 }
   0xa   :  { %21 = vsyncpa [#allocation4 + $0x1], 0  ;;  %s2137_s30 = smov 0   ;;  %s2139_s10 = smov 0  }
   0xb   :  { %s2141_s11 = smov 0   ;;  %s2143_s12 = smov 0  }
   0xc LB: > { %s2077_s13 = smov [#allocation5]   ;;  %s2158_s15 = sadd.s32 4294967295, %s2075_s12   ;;  %s2075_s12 = sphi %s2143_s12, %s2453_s12   ;;  %s2071_s11 = sphi %s2141_s11, %s2452_s11   ;;  %s2067_s10 = sphi %s2139_s10, %s2451_s10   ;;  %s2063_s30 = sphi %s2137_s30, %s2450_s30  }
   0xd   : > { %s264_s14 = sshll.u32 %s2077_s13, 4  ;;  %p1448_p0 = scmp.ge.s32.totalorder %s2075_s12, 1  ;;  %s265_s14 = int_to_ptr.vmem [resolvable:$true] %s264_s14 }
   0xe   : > { %p2423_p1 = scmp.eq.s32.totalorder %s2158_s15, 0  ;;  %p252_p2 = scmp.lt.s32.totalorder %s2075_s12, 3 }
   0xf   : > { %s2078_s17 = smov [#allocation8]   ;;  %s2079_s20 = smov [#allocation7]  }
  0x10   : > { %p2163_p3 = pnand %p1448_p0, %p252_p2  ;;  %s296_s18 = sshll.u32 %s2078_s17, 4  ;;  %s2176_s18 = int_to_ptr.vmem [resolvable:$true] %s296_s18 }
  0x11   : > { %s280_s21 = sshll.u32 %s2079_s20, 4  ;;  %s1882_s22 = scalar_lea.vmem %s265_s14, 6272  ;;  %s2178_s21 = int_to_ptr.vmem [resolvable:$true] %s280_s21 }
  0x12   : > { %s2431_s16 = scalar_select %p2163_p3, 1, 0 }
  0x13   : > { %p1727_p5 = pneg %p2163_p3  ;;  %p1883_p8 = scmp.ne.s32.totalorder %s265_s14, %s1882_s22 }
  0x14   : > { %p1890_p11 = scmp.lt.s32.totalorder %s265_s14, %s265_s14  ;;  %p1891_p12 = scmp.lt.s32.totalorder %s1882_s22, %s1882_s22 }
  0x15   : > { %p2172_p6 = pnand %p1727_p5, %p2423_p1 }
  0x16   : > { %p1892_p13 = por %p1891_p12, %p1890_p11 }
  0x17   : > { %p1873_p7 = pneg %p2172_p6 }
  0x19   : > { %p1885_p9 = pnand %p1883_p8, %p1873_p7 }
  0x1b   : > { %p1886_p10 = pneg %p1885_p9 }
  0x1d   : > { %p1893_p0 = pnand %p1892_p13, %p1886_p10 }
  0x1f   : > { %1896 = shalt.err (!%p1893_p0)
}
  0x20   : > { %s2080_s23 = smov 64   ;;  %s2081_s24 = smov 4  }
  0x21   : > { %s2433_s1 = sld [smem:[#allocation16_spill]]  ;;  %s1908_s27 = scalar_lea.vmem %s2176_s18, 1024 }
  0x22   : > { %p1909_p2 = scmp.ne.s32.totalorder %s2176_s18, %s1908_s27  ;;  %p1916_p9 = scmp.lt.s32.totalorder %s2176_s18, %s2176_s18 }
  0x23   : > { %p1917_p10 = scmp.lt.s32.totalorder %s1908_s27, %s1908_s27 }
  0x24   : > { %p1911_p5 = pnand %p1909_p2, %p1873_p7 }
  0x25   : > { %p1918_p11 = por %p1917_p10, %p1916_p9 }
  0x26   : > { %p1912_p8 = pneg %p1911_p5 }
  0x27   : > { %1730 = dma.hbm_to_vmem [thread:$0]  (!%p2172_p6), %s2433_s1, 6272, %s265_s14, [#allocation6], %s2080_s23, %s2080_s23, %s2081_s24  }
  0x28   : > { %p1919_p12 = pnand %p1918_p11, %p1912_p8 }
  0x2a   : > { %1922 = shalt.err (!%p1919_p12)
}
  0x2b   : > { %s2434_s5 = sld [smem:[#allocation18_spill]]  ;;  %s1934_s13 = scalar_lea.vmem %s2178_s21, 1024 }
  0x2c   : > { %p1935_p13 = scmp.ne.s32.totalorder %s2178_s21, %s1934_s13  ;;  %p1942_p5 = scmp.lt.s32.totalorder %s2178_s21, %s2178_s21 }
  0x2d   : > { %p1943_p8 = scmp.lt.s32.totalorder %s1934_s13, %s1934_s13 }
  0x2e   : > { %p1937_p0 = pnand %p1935_p13, %p1873_p7 }
  0x2f   : > { %p1944_p9 = por %p1943_p8, %p1942_p5 }
  0x30   : > { %p1938_p2 = pneg %p1937_p0 }
  0x31   : > { %1736 = dma.hbm_to_vmem [thread:$0]  (!%p2172_p6), %s2434_s5, 1024, %s2176_s18, [#allocation9], %s2080_s23, %s2080_s23, %s2081_s24  }
  0x32   : > { %p1945_p10 = pnand %p1944_p9, %p1938_p2 }
  0x34   : > { %1948 = shalt.err (!%p1945_p10)
}
  0x35   : > { %s2435_s3 = sld [smem:[#allocation17_spill]]  ;;  %s2082_s18 = smov [#allocation10]  }
  0x36   : > { %s312_s20 = sshll.u32 %s2082_s18, 4  ;;  %s313_s20 = int_to_ptr.vmem [resolvable:$true] %s312_s20 }
  0x37   : > { %s1960_s22 = scalar_lea.vmem %s313_s20, 1024  ;;  %p1968_p0 = scmp.lt.s32.totalorder %s313_s20, %s313_s20 }
  0x38   : > { %p1961_p11 = scmp.ne.s32.totalorder %s313_s20, %s1960_s22  ;;  %p1969_p2 = scmp.lt.s32.totalorder %s1960_s22, %s1960_s22 }
  0x3a   : > { %p1963_p12 = pnand %p1961_p11, %p1873_p7  ;;  %p1970_p5 = por %p1969_p2, %p1968_p0 }
  0x3b   : > { %1733 = dma.hbm_to_vmem [thread:$0]  (!%p2172_p6), %s2435_s3, 1024, %s2178_s21, [#allocation6], %s2080_s23, %s2080_s23, %s2081_s24  }
  0x3c   : > { %p1964_p13 = pneg %p1963_p12 }
  0x3e   : > { %p1971_p8 = pnand %p1970_p5, %p1964_p13 }
  0x40   : > { %1974 = shalt.err (!%p1971_p8)
}
  0x41   : > { %s2436_s7 = sld [smem:[#allocation19_spill]]  ;;  %s1447_s19 = sadd.s32 4294967294, %s2075_s12  }
  0x42   : > { %s2238_s26 = sadd.s32 1, %s2075_s12   ;;  %s34_s28 = sadd.s32 1, %s2071_s11 }
  0x43   : > { %s31_s27 = ssub.s32 %s2075_s12, %s2238_s26  ;;  %p41_p9 = scmp.ne.s32.totalorder %s2071_s11, %s2067_s10 }
  0x44   : > { %p32_p7 = scmp.eq.s32.totalorder %s31_s27, 0  ;;  %p42_p10 = scmp.eq.s32.totalorder %s2075_s12, 0 }
  0x45   : > { %p47_p11 = scmp.ne.s32.totalorder %s2067_s10, %s2063_s30  ;;  %p245_p0 = scmp.eq.s32.totalorder %s1447_s19, 1 }
  0x46   : > { %s2249_s29 = scalar_select %p32_p7, %s2071_s11, %s34_s28  }
  0x47   : > { %1739 = dma.hbm_to_vmem [thread:$0]  (!%p2172_p6), %s2436_s7, 1024, %s313_s20, [#allocation9], %s2080_s23, %s2080_s23, %s2081_s24  }
  0x48   : > { %p43_p12 = por %p42_p10, %p41_p9  ;;  %p2253_p13 = por %p2423_p1, %p47_p11 }
  0x49   : > { %p239_p6 = scmp.eq.s32.totalorder %s2158_s15, 1  ;;  %p1752_p2 = scmp.lt.s32.totalorder %s2075_s12, 2 }
  0x4a   : > { %s2437_s13 = scalar_select %p2253_p13, 1, 0 }
  0x4b   : > { %s329_s23 = sand.u32 1, %s2071_s11   ;;  %p2260_p5 = por %p239_p6, %p41_p9 }
  0x4c   : > { %p2264_p8 = por %p245_p0, %p47_p11  ;;  %s1704_s17 = smul.u32 56, %s329_s23 }
  0x4d   : > { %s2438_s24 = scalar_select %p2260_p5, 1, 0 }
  0x4e   : > { %s2439_s14 = scalar_select %p2264_p8, 1, 0 }
  0x4f   : > { %s1705_s18 = smul.u32 896, %s2075_s12  ;;  %p2269_p7 = pnand %p1752_p2, %p43_p12 }
  0x50   : > { %s333_s19 = scalar_lea.vmem [#allocation2], %s1704_s17  ;;  %s330_s28 = scalar_lea.sflag [#allocation3], %s329_s23 }
  0x51   : > { %s2276_s25 = scalar_lea.hbm %s2413_s0, %s1705_s18  ;;  %s341_s27 = sshll.u32 %s333_s19, 4  ;;  %s342_s27 = int_to_ptr.vmem [resolvable:$true] %s341_s27 }
  0x52   : > { %s1975_s1 = scalar_lea.hbm %s2276_s25, 896  ;;  %p1977_p10 = pneg %p2269_p7 }
  0x53   : > { %p1976_p9 = scmp.ne.s32.totalorder %s2276_s25, %s1975_s1  ;;  %s1980_s22 = scalar_lea.hbm %s2413_s0, 1792 }
  0x54   : > { %p1981_p6 = scmp.lt.s32.totalorder %s2276_s25, %s2413_s0  ;;  %p1982_p0 = scmp.lt.s32.totalorder %s1980_s22, %s1975_s1 }
  0x55   : > { %p1978_p11 = pnand %p1977_p10, %p1976_p9 }
  0x56   : > { %p1983_p2 = por %p1982_p0, %p1981_p6 }
  0x57   : > { %p1979_p12 = pneg %p1978_p11 }
  0x59   : > { %p1984_p4 = pnand %p1983_p2, %p1979_p12 }
  0x5b   : > { %1987 = shalt.err (!%p1984_p4)
}
  0x5c   : > { %s1988_s17 = scalar_lea.vmem %s342_s27, 896  ;;  %s2083_s23 = smov [#allocation2]  }
  0x5d   : > { %p1989_p1 = scmp.ne.s32.totalorder %s342_s27, %s1988_s17  ;;  %s1993_s19 = sshll.u32 %s2083_s23, 4  ;;  %s1994_s19 = int_to_ptr.vmem [resolvable:$false] %s1993_s19 }
  0x5e   : > { %s1995_s7 = scalar_lea.vmem %s1994_s19, 1792  ;;  %p1996_p9 = scmp.lt.s32.totalorder %s342_s27, %s1994_s19 }
  0x5f   : > { %p1991_p8 = pnand %p1989_p1, %p1977_p10  ;;  %p1997_p11 = scmp.lt.s32.totalorder %s1995_s7, %s1988_s17 }
  0x61   : > { %p1992_p5 = pneg %p1991_p8  ;;  %p1998_p13 = por %p1997_p11, %p1996_p9 }
  0x63   : > { %p1999_p3 = pnand %p1998_p13, %p1992_p5 }
  0x65   : > { %2002 = shalt.err (!%p1999_p3)
}
  0x66   : > { %1743 = dma.hbm_to_vmem [thread:$0]  (!%p2269_p7), %s2276_s25, 896, %s342_s27, %s330_s28  }
  0x67   : > { %p2441_p12 = scmp.ne.s32.totalorder %s2431_s16, 0 }
  0x68   : > { %s2295_s1 = sand.u32 (!%p2441_p12), 1, %s2067_s10   ;;  %p2442_p1 = scmp.ne.s32.totalorder (!%p2441_p12), %s2437_s13, 0 }
  0x69   : > { %350 = sbr.rel (%p2441_p12) target bundleno = 994 (0x3e2), region = 56  ;;  %s353_s5 = scalar_lea.sflag (!%p2441_p12), [#allocation3], %s2295_s1 }
  0x6a   : > { %s1706_s3 = smul.u32 (!%p2441_p12), 56, %s2295_s1 }
  0x6c   : > { %s2299_s22 = scalar_lea.vmem (!%p2441_p12), [#allocation2], %s1706_s3 }
  0x6e   : > { %2046 = dma.done.wait (%p2442_p1), %s353_s5, 896  }
  0x6f   : > { %2048 = vsyncadd (%p2442_p1), %s353_s5, 4294966400  ;;  %p2443_p3 = scmp.eq.s32.totalorder %s2158_s15, 0 }
  0x71   : > { %2050 = dma.done.wait (%p2443_p3), [#allocation6], 7296   ;;  %p2444_p4 = pmov %p2443_p3 }
  0x72   : > { %p2445_p13 = pmov %p2443_p3 }
  0x73   : > { %2052 = vsyncadd (%p2444_p4), [#allocation6], 4294960000 }
  0x74   : > { %2054 = dma.done.wait (%p2445_p13), [#allocation9], 2048   ;;  %p2446_p5 = pmov %p2443_p3 }
  0x75   : > { %v1798_v0 = vld [vmem:[#allocation5 + $0x78] sm:$0xff]   ;;  %v1802_v4 = vld [vmem:[#allocation5 + $0x70] sm:$0xff]   ;;  %v1806_v8 = vld [vmem:[#allocation5 + $0x68] sm:$0xff]   ;;  %v2084_v44 = vmov 0.0   ;;  %vm2085_vm0 = vmmov 0   ;;  %vm821_vm1 = vcmask 130048  }
  0x76   : > { %2056 = vsyncadd (%p2446_p5), [#allocation9], 4294965248  ;;  %v1799_v1 = vld [vmem:[#allocation5 + $0x38] sm:$0xff]   ;;  %1543 = vmatprep.subr.bf16.mxu0 %v1798_v0  ;;  %v1803_v5 = vld [vmem:[#allocation5 + $0x30] sm:$0xff]   ;;  %s1460_s28 = sshll.u32 %s2295_s1, 3  ;;  %s1540_s17 = sshll.u32 %s2158_s15, 7 }
  0x77   : > { %v1800_v2 = vld [vmem:[#allocation5 + $0xf8] sm:$0xff]   ;;  %1544 = vmatpush3.bf16.msra.mxu0 %v1799_v1  ;;  %v1804_v6 = vld [vmem:[#allocation5 + $0xf0] sm:$0xff]   ;;  %v1807_v9 = vld [vmem:[#allocation5 + $0x28] sm:$0xff]   ;;  %s406_s23 = scalar_lea.vmem [#allocation11], %s1460_s28  ;;  %s1326_s7 = scalar_lea.sflag [#allocation4], %s2295_s1 }
  0x78   : > { %v1801_v3 = vld [vmem:[#allocation5 + $0xb8] sm:$0xff]   ;;  %1565 = vmatprep.subr.bf16.mxu1 %v1800_v2  ;;  %1545 = vmatprep.subr.bf16.mxu0 %v1802_v4  ;;  %v1805_v7 = vld [vmem:[#allocation5 + $0xb0] sm:$0xff]   ;;  %v1808_v10 = vld [vmem:[#allocation5 + $0xe8] sm:$0xff]   ;;  %s1339_s19 = sshll.u32 %s406_s23, 4  ;;  %p2447_p7 = scmp.ne.s32.totalorder %s2438_s24, 0  ;;  %s2372_s19 = int_to_ptr.vmem [resolvable:$true] %s1339_s19 }
  0x79   : > { %1566 = vmatpush3.bf16.msra.mxu1 %v1801_v3  ;;  %v1809_v11 = vld [vmem:[#allocation5 + $0xa8] sm:$0xff]   ;;  %v1810_v12 = vld [vmem:[#allocation5 + $0x60] sm:$0xff]   ;;  %v1814_v16 = vld [vmem:[#allocation5 + $0x58] sm:$0xff]   ;;  %s2003_s16 = scalar_lea.vmem %s2372_s19, 128  ;;  %s2086_s15 = smov [#allocation11]  }
  0x7a   : > { %1567 = vmatprep.subr.bf16.mxu1 %v1804_v6  ;;  %v1811_v13 = vld [vmem:[#allocation5 + $0x20] sm:$0xff]   ;;  %v1815_v17 = vld [vmem:[#allocation5 + $0x18] sm:$0xff]   ;;  %v1818_v20 = vld [vmem:[#allocation5 + $0x50] sm:$0xff]   ;;  %p2004_p8 = scmp.ne.s32.totalorder %s2372_s19, %s2003_s16  ;;  %s2007_s13 = sshll.u32 %s2086_s15, 4  ;;  %s2008_s13 = int_to_ptr.vmem [resolvable:$false] %s2007_s13 }
  0x7b   : > { %1546 = vmatpush3.bf16.msra.mxu0 %v1803_v5  ;;  %v1812_v14 = vld [vmem:[#allocation5 + $0xe0] sm:$0xff]   ;;  %v1816_v18 = vld [vmem:[#allocation5 + $0xd8] sm:$0xff]   ;;  %v1819_v21 = vld [vmem:[#allocation5 + $0x10] sm:$0xff]   ;;  %s2009_s20 = scalar_lea.vmem %s2008_s13, 256  ;;  %p2010_p0 = scmp.lt.s32.totalorder %s2372_s19, %s2008_s13 }
  0x7c   : > { %1547 = vmatprep.subr.bf16.mxu0 %v1806_v8  ;;  %v1813_v15 = vld [vmem:[#allocation5 + $0xa0] sm:$0xff]   ;;  %v1817_v19 = vld [vmem:[#allocation5 + $0x98] sm:$0xff]   ;;  %v1820_v22 = vld [vmem:[#allocation5 + $0xd0] sm:$0xff]   ;;  %p2005_p10 = pnand %p2004_p8, %p2447_p7  ;;  %p2011_p2 = scmp.lt.s32.totalorder %s2009_s20, %s2003_s16 }
  0x7d   : > { %1568 = vmatpush3.bf16.msra.mxu1 %v1805_v7  ;;  %v1821_v23 = vld [vmem:[#allocation5 + $0x90] sm:$0xff]   ;;  %v1822_v24 = vld [vmem:[#allocation5 + $0x48] sm:$0xff]   ;;  %v1826_v28 = vld [vmem:[#allocation5 + $0x40] sm:$0xff]  }
  0x7e   : > { %1569 = vmatprep.subr.bf16.mxu1 %v1808_v10  ;;  %v1823_v25 = vld [vmem:[#allocation5 + $0x8] sm:$0xff]   ;;  %v1827_v29 = vld [vmem:[#allocation5] sm:$0xff]   ;;  %v409_v31 = vld [vmem:[%s2299_s22 + $0x8] sm:$0xff]  ;;  %p2006_p6 = pneg %p2005_p10  ;;  %p2012_p9 = por %p2011_p2, %p2010_p0 }
  0x7f   : > { %1548 = vmatpush3.bf16.msra.mxu0 %v1807_v9  ;;  %v1824_v26 = vld [vmem:[#allocation5 + $0xc8] sm:$0xff]   ;;  %v1828_v30 = vld [vmem:[#allocation5 + $0xc0] sm:$0xff]   ;;  %v416_v32 = vpack.c.bf16 %v409_v31, %v409_v31  ;;  %v1830_v36 = vld [vmem:[#allocation5 + $0x178] sm:$0xff]  }
  0x80   : > { %1549 = vmatprep.subr.bf16.mxu0 %v1810_v12  ;;  %v1825_v27 = vld [vmem:[#allocation5 + $0x88] sm:$0xff]   ;;  %v1829_v33 = vld [vmem:[#allocation5 + $0x80] sm:$0xff]   ;;  %v1831_v39 = vld [vmem:[#allocation5 + $0x138] sm:$0xff]   ;;  %p2013_p11 = pnand %p2012_p9, %p2006_p6 }
  0x81   : > { %1570 = vmatpush3.bf16.msra.mxu1 %v1809_v11  ;;  %v408_v34 = vld [vmem:[%s2299_s22] sm:$0xff]  ;;  %v411_v37 = vld [vmem:[%s2299_s22 + $0x18] sm:$0xff]  ;;  %857 = vmatprep.mubr.bf16.mxu0 %v416_v32  ;;  %v410_v40 = vld [vmem:[%s2299_s22 + $0x10] sm:$0xff] }
  0x82   : > { %1571 = vmatprep.subr.bf16.mxu1 %v1812_v14  ;;  %v415_v35 = vpack.c.bf16 %v408_v34, %v408_v34  ;;  %v418_v38 = vpack.c.bf16 %v411_v37, %v411_v37  ;;  %v417_v41 = vpack.c.bf16 %v410_v40, %v410_v40  ;;  %v1832_v42 = vld [vmem:[#allocation5 + $0x170] sm:$0xff]   ;;  %v1834_v45 = vld [vmem:[#allocation5 + $0x168] sm:$0xff]   ;;  %v1836_v47 = vld [vmem:[#allocation5 + $0x160] sm:$0xff]  }
  0x83   : > { %1550 = vmatpush3.bf16.msra.mxu0 %v1811_v13  ;;  %v1833_v43 = vld [vmem:[#allocation5 + $0x130] sm:$0xff]   ;;  %v1835_v46 = vld [vmem:[#allocation5 + $0x128] sm:$0xff]   ;;  %v1837_v48 = vld [vmem:[#allocation5 + $0x120] sm:$0xff]  }
  0x84   : > { %1551 = vmatprep.subr.bf16.mxu0 %v1814_v16  ;;  %897 = vmatprep.mubr.bf16.mxu1 %v418_v38  ;;  %v1838_v49 = vld [vmem:[#allocation5 + $0x158] sm:$0xff]   ;;  %v1840_v51 = vld [vmem:[#allocation5 + $0x150] sm:$0xff]   ;;  %v1846_v53 = vld [vmem:[#allocation5 + $0x180] sm:$0xff]  }
  0x85   : > { %1572 = vmatpush3.bf16.msra.mxu1 %v1813_v15  ;;  %v1839_v50 = vld [vmem:[#allocation5 + $0x118] sm:$0xff]   ;;  %v1841_v52 = vld [vmem:[#allocation5 + $0x110] sm:$0xff]   ;;  %v1842_v55 = vld [vmem:[#allocation5 + $0x148] sm:$0xff]  }
  0x86   : > { %1573 = vmatprep.subr.bf16.mxu1 %v1816_v18  ;;  %v413_v54 = vld [vmem:[%s2299_s22 + $0x28] sm:$0xff]  ;;  %v414_v57 = vld [vmem:[%s2299_s22 + $0x30] sm:$0xff]  ;;  %v1843_v59 = vld [vmem:[#allocation5 + $0x108] sm:$0xff]  }
  0x87   : > { %1552 = vmatpush3.bf16.msra.mxu0 %v1815_v17  ;;  %v420_v56 = vpack.c.bf16 %v413_v54, %v413_v54  ;;  %v421_v58 = vpack.c.bf16 %v414_v57, %v414_v57  ;;  %v1844_v60 = vld [vmem:[#allocation5 + $0x140] sm:$0xff]   ;;  %v412_v62 = vld [vmem:[%s2299_s22 + $0x20] sm:$0xff]  ;;  %v1848_v1 = vld [vmem:[#allocation7 + $0x30] sm:$0xff]   ;;  %s2370_s22 = scalar_lea.hbm %s2422_s9, %s1540_s17 }
  0x88   : > { %1553 = vmatprep.subr.bf16.mxu0 %v1818_v20  ;;  %v1845_v61 = vld [vmem:[#allocation5 + $0x100] sm:$0xff]   ;;  %v419_v63 = vpack.c.bf16 %v412_v62, %v412_v62  ;;  %v1849_v2 = vld [vmem:[#allocation7 + $0x28] sm:$0xff]   ;;  %v1850_v3 = vld [vmem:[#allocation7 + $0x20] sm:$0xff]  }
  0x89   : > { %1574 = vmatpush3.bf16.msra.mxu1 %v1817_v19  ;;  %v1847_v0 = vld [vmem:[#allocation7 + $0x38] sm:$0xff]   ;;  %v1852_v5 = vld [vmem:[#allocation7 + $0x10] sm:$0xff]   ;;  %v1853_v6 = vld [vmem:[#allocation7 + $0x8] sm:$0xff]  }
  0x8a   : > { %1575 = vmatprep.subr.bf16.mxu1 %v1820_v22  ;;  %v1851_v4 = vld [vmem:[#allocation7 + $0x18] sm:$0xff]   ;;  %v1854_v7 = vld [vmem:[#allocation7] sm:$0xff]   ;;  %v1856_v9 = vld [vmem:[#allocation8 + $0x30] sm:$0xff]  }
  0x8b   : > { %1554 = vmatpush3.bf16.msra.mxu0 %v1819_v21  ;;  %v1855_v8 = vld [vmem:[#allocation8 + $0x38] sm:$0xff]   ;;  %v1857_v10 = vld [vmem:[#allocation8 + $0x28] sm:$0xff]   ;;  %v1858_v11 = vld [vmem:[#allocation8 + $0x20] sm:$0xff]  }
  0x8c   : > { %1555 = vmatprep.subr.bf16.mxu0 %v1822_v24  ;;  %v1859_v12 = vld [vmem:[#allocation8 + $0x18] sm:$0xff]   ;;  %v1860_v13 = vld [vmem:[#allocation8 + $0x10] sm:$0xff]   ;;  %v1861_v40 = vld [vmem:[#allocation8 + $0x8] sm:$0xff]  }
  0x8d   : > { %1576 = vmatpush3.bf16.msra.mxu1 %v1821_v23  ;;  %v1869_v57 = vld [vmem:[#allocation10 + $0x8] sm:$0xff]  }
  0x8e   : > { %1577 = vmatprep.subr.bf16.mxu1 %v1824_v26 }
  0x8f   : > { %1556 = vmatpush3.bf16.msra.mxu0 %v1823_v25 }
  0x90   : > { %1557 = vmatprep.subr.bf16.mxu0 %v1826_v28 }
  0x91   : > { %1578 = vmatpush3.bf16.msra.mxu1 %v1825_v27  ;;  %v1461_v27 = vld [vmem:[%s2415_s2] ss:$0 sm:$0xff] }
  0x92   : > { %1579 = vmatprep.subr.bf16.mxu1 %v1828_v30 }
  0x93   : > { %1558 = vmatpush3.bf16.msra.mxu0 %v1827_v29 }
  0x94   : > { %1587 = vmatprep.subr.bf16.mxu0 %v1830_v36 }
  0x95   : > { %1580 = vmatpush3.bf16.msra.mxu1 %v1829_v33 }
  0x96   : > { %858 = vmatmul.mubr.bf16.vlgmr.msra.gmra.mxu0 %v415_v35  ;;  %1638 = vmatprep.subr.bf16.mxu1 %v2084_v44 }
  0x97   : > { %1588 = vmatpush3.bf16.msra.mxu0 %v1831_v39  ;;  %937 = vmatprep.mubr.bf16.mxu0 %v420_v56 }
  0x98   : > { %898 = vmatmul.mubr.bf16.vlgmr.msra.gmra.mxu1 %v417_v41  ;;  %1589 = vmatprep.subr.bf16.mxu0 %v1832_v42  ;;  %v1862_v41 = vld [vmem:[#allocation8] sm:$0xff]   ;;  %v1863_v42 = vld [vmem:[#allocation10 + $0x38] sm:$0xff]  }
  0x99   : > { %1640 = vmatprep.mubr.msk.bf16.mxu1 %vm2085_vm0, %v2084_v44  ;;  %1639 = vmatpush3.bf16.msra.mxu1 %v1846_v53 }
  0x9a   : > { %1644 = vmatprep.subr.bf16.mxu1 %v2084_v44 }
  0x9b   : > { %1590 = vmatpush3.bf16.msra.mxu0 %v1833_v43  ;;  %v1864_v43 = vld [vmem:[#allocation10 + $0x30] sm:$0xff]  }
  0x9c   : > { %1591 = vmatprep.subr.bf16.mxu0 %v1834_v45  ;;  %v1865_v45 = vld [vmem:[#allocation10 + $0x28] sm:$0xff]  }
  0x9f   : > { %1592 = vmatpush3.bf16.msra.mxu0 %v1835_v46  ;;  %v1866_v46 = vld [vmem:[#allocation10 + $0x20] sm:$0xff]  }
  0xa0   : > { %1593 = vmatprep.subr.bf16.mxu0 %v1836_v47  ;;  %1641 = vmatmul.mubr.msk.bf16.vlgmr.msra.gmra.mxu1 %vm821_vm1, %v421_v58  ;;  %v1867_v47 = vld [vmem:[#allocation10 + $0x18] sm:$0xff]   ;;  %v1870_v58 = vld [vmem:[#allocation10] sm:$0xff]  }
  0xa1   : > { %1660 = vmatprep.mubr.msk.bf16.mxu1 %vm2085_vm0, %v2084_v44  ;;  %1645 = vmatpush3.bf16.msra.mxu1 %v1847_v0 }
  0xa2   : > { %1646 = vmatprep.subr.bf16.mxu1 %v2084_v44 }
  0xa3   : > { %1594 = vmatpush3.bf16.msra.mxu0 %v1837_v48  ;;  %v1868_v48 = vld [vmem:[#allocation10 + $0x10] sm:$0xff]  }
  0xa4   : > { %1595 = vmatprep.subr.bf16.mxu0 %v1838_v49  ;;  %v1512_v49 = vld [vmem:[%s2417_s4] ss:$0 sm:$0xff] }
  0xa5   : > { %1647 = vmatpush3.bf16.msra.mxu1 %v1848_v1 }
  0xa6   : > { %1648 = vmatprep.subr.bf16.mxu1 %v2084_v44 }
  0xa7   : > { %1596 = vmatpush3.bf16.msra.mxu0 %v1839_v50 }
  0xa8   : > { %1597 = vmatprep.subr.bf16.mxu0 %v1840_v51 }
  0xa9   : > { %1649 = vmatpush3.bf16.msra.mxu1 %v1849_v2 }
  0xaa   : > { %1650 = vmatprep.subr.bf16.mxu1 %v2084_v44 }
  0xab   : > { %1598 = vmatpush3.bf16.msra.mxu0 %v1841_v52 }
  0xac   : > { %1599 = vmatprep.subr.bf16.mxu0 %v1842_v55 }
  0xad   : > { %1651 = vmatpush3.bf16.msra.mxu1 %v1850_v3 }
  0xae   : > { %1652 = vmatprep.subr.bf16.mxu1 %v2084_v44 }
  0xaf   : > { %1600 = vmatpush3.bf16.msra.mxu0 %v1843_v59  ;;  %v1521_v59 = vld [vmem:[%s2419_s6] ss:$0 sm:$0xff] }
  0xb0   : > { %1601 = vmatprep.subr.bf16.mxu0 %v1844_v60 }
  0xb1   : > { %1653 = vmatpush3.bf16.msra.mxu1 %v1851_v4 }
  0xb2   : > { %1654 = vmatprep.subr.bf16.mxu1 %v2084_v44 }
  0xb3   : > { %1602 = vmatpush3.bf16.msra.mxu0 %v1845_v61 }
  0xb4   : > { %1664 = vmatprep.subr.bf16.mxu0 %v2084_v44 }
  0xb5   : > { %1655 = vmatpush3.bf16.msra.mxu1 %v1852_v5 }
  0xb6   : > { %938 = vmatmul.mubr.bf16.vlgmr.msra.gmra.mxu0 %v419_v63  ;;  %1656 = vmatprep.subr.bf16.mxu1 %v2084_v44 }
  0xb7   : > { %1680 = vmatprep.mubr.msk.bf16.mxu0 %vm2085_vm0, %v2084_v44  ;;  %1665 = vmatpush3.bf16.msra.mxu0 %v1855_v8 }
  0xb8   : > { %1666 = vmatprep.subr.bf16.mxu0 %v2084_v44 }
  0xb9   : > { %1657 = vmatpush3.bf16.msra.mxu1 %v1853_v6 }
  0xba   : > { %1658 = vmatprep.subr.bf16.mxu1 %v2084_v44 }
  0xbb   : > { %1667 = vmatpush3.bf16.msra.mxu0 %v1856_v9 }
  0xbc   : > { %1668 = vmatprep.subr.bf16.mxu0 %v2084_v44 }
  0xbd   : > { %1659 = vmatpush3.bf16.msra.mxu1 %v1854_v7 }
  0xbe   : > { %1684 = vmatprep.subr.bf16.mxu1 %v2084_v44 }
  0xbf   : > { %1669 = vmatpush3.bf16.msra.mxu0 %v1857_v10 }
  0xc0   : > { %1670 = vmatprep.subr.bf16.mxu0 %v2084_v44 }
  0xc3   : > { %1671 = vmatpush3.bf16.msra.mxu0 %v1858_v11 }
  0xc4   : > { %1672 = vmatprep.subr.bf16.mxu0 %v2084_v44 }
  0xc7   : > { %1673 = vmatpush3.bf16.msra.mxu0 %v1859_v12 }
  0xc8   : > { %1674 = vmatprep.subr.bf16.mxu0 %v2084_v44 }
  0xcb   : > { %1675 = vmatpush3.bf16.msra.mxu0 %v1860_v13 }
  0xcc   : > { %1676 = vmatprep.subr.bf16.mxu0 %v2084_v44 }
  0xcf   : > { %1677 = vmatpush3.bf16.msra.mxu0 %v1861_v40 }
  0xd0   : > { %1678 = vmatprep.subr.bf16.mxu0 %v2084_v44 }
  0xd3   : > { %1679 = vmatpush3.bf16.msra.mxu0 %v1862_v41 }
 0x156   : > { %v1559_v14 = vpop.f32.mrf.mxu0 }
 0x158   : > { %v1560_v15 = vpop.f32.mrf.mxu0  ;;  %v1581_v16 = vpop.f32.mrf.mxu1 }
 0x159   : > { %v1561_v26 = vadd.f32 %v1560_v15, %v1559_v14 }
 0x15a   : > { %v1562_v17 = vpop.f32.mrf.mxu0  ;;  %v1582_v18 = vpop.f32.mrf.mxu1 }
 0x15b   : > { %v860_v28 = vadd.f32 %v1561_v26, %v1461_v27  ;;  %v1583_v29 = vadd.f32 %v1582_v18, %v1581_v16 }
 0x15c   : > { %v1563_v19 = vpop.f32.mrf.mxu0  ;;  %v1584_v20 = vpop.f32.mrf.mxu1 }
 0x15d   : > { %v900_v32 = vadd.f32 %v1583_v29, %v860_v28 }
 0x15e   : > { %v1585_v21 = vpop.f32.mrf.mxu1 }
 0x160   : > { %v979_v22 = vpop.f32.mrf.mxu1 }
 0x162   : > { %v1642_v23 = vpop.f32.mrf.mxu1 }
 0x164   : > { %v982_v24 = vpop.f32.mrf.mxu1 }
 0x166   : > { %v1643_v25 = vpop.f32.mrf.mxu1 }
 0x176   : > { %v1603_v30 = vpop.f32.mrf.mxu0 }
 0x178   : > { %v1604_v31 = vpop.f32.mrf.mxu0 }
 0x179   : > { %v1605_v33 = vadd.f32 %v1604_v31, %v1603_v30 }
 0x17a   : > { %v1606_v34 = vpop.f32.mrf.mxu0 }
 0x17b   : > { %v940_v35 = vadd.f32 %v1605_v33, %v900_v32 }
 0x17c   : > { %v1607_v36 = vpop.f32.mrf.mxu0 }
 0x17d   : > { %v980_v37 = vadd.f32 %v979_v22, %v940_v35 }
 0x17f   : > { %v985_v38 = vmax.f32 %v980_v37, 0.0 }
 0x181   : > { %v986_v39 = vpack.c.bf16 %v985_v38, %v985_v38 }
 0x183   : > { %1661 = vmatmul.mubr.bf16.vlgmr.msra.gmra.mxu1 %v986_v39 }
 0x184   : > { %1700 = vmatprep.mubr.msk.bf16.mxu1 %vm2085_vm0, %v2084_v44  ;;  %1685 = vmatpush3.bf16.msra.mxu1 %v1863_v42 }
 0x185   : > { %1686 = vmatprep.subr.bf16.mxu1 %v2084_v44 }
 0x188   : > { %1687 = vmatpush3.bf16.msra.mxu1 %v1864_v43 }
 0x189   : > { %1688 = vmatprep.subr.bf16.mxu1 %v2084_v44 }
 0x18c   : > { %1689 = vmatpush3.bf16.msra.mxu1 %v1865_v45 }
 0x18d   : > { %1690 = vmatprep.subr.bf16.mxu1 %v2084_v44 }
 0x190   : > { %1691 = vmatpush3.bf16.msra.mxu1 %v1866_v46 }
 0x191   : > { %1692 = vmatprep.subr.bf16.mxu1 %v2084_v44 }
 0x194   : > { %1693 = vmatpush3.bf16.msra.mxu1 %v1867_v47 }
 0x195   : > { %1694 = vmatprep.subr.bf16.mxu1 %v2084_v44 }
 0x198   : > { %1695 = vmatpush3.bf16.msra.mxu1 %v1868_v48 }
 0x199   : > { %1696 = vmatprep.subr.bf16.mxu1 %v2084_v44 }
 0x19c   : > { %1697 = vmatpush3.bf16.msra.mxu1 %v1869_v57 }
 0x19d   : > { %1698 = vmatprep.subr.bf16.mxu1 %v2084_v44  ;;  %v1530_v44 = vld [vmem:[%s2421_s8] ss:$0 sm:$0xff] }
 0x1a0   : > { %1699 = vmatpush3.bf16.msra.mxu1 %v1870_v58 }
 0x243   : > { %v1092_v50 = vpop.f32.mrf.mxu1 }
 0x244   : > { %v1093_v51 = vadd.f32 %v1512_v49, %v1092_v50 }
 0x245   : > { %v1662_v52 = vpop.f32.mrf.mxu1 }
 0x246   : > { %v1098_v53 = vmax.f32 %v1093_v51, 0.0 }
 0x247   : > { %v1095_v54 = vpop.f32.mrf.mxu1 }
 0x248   : > { %v1099_v55 = vpack.c.bf16 %v1098_v53, %v1098_v53 }
 0x249   : > { %v1663_v56 = vpop.f32.mrf.mxu1 }
 0x24a   : > { %1681 = vmatmul.mubr.bf16.vlgmr.msra.gmra.mxu0 %v1099_v55 }
 0x30a   : > { %v1205_v60 = vpop.f32.mrf.mxu0 }
 0x30b   : > { %v1206_v61 = vadd.f32 %v1521_v59, %v1205_v60 }
 0x30c   : > { %v1682_v62 = vpop.f32.mrf.mxu0 }
 0x30d   : > { %v1211_v63 = vmax.f32 %v1206_v61, 0.0 }
 0x30e   : > { %v1208_v0 = vpop.f32.mrf.mxu0 }
 0x30f   : > { %v1212_v1 = vpack.c.bf16 %v1211_v63, %v1211_v63 }
 0x310   : > { %v1683_v2 = vpop.f32.mrf.mxu0 }
 0x311   : > { %1701 = vmatmul.mubr.bf16.vlgmr.msra.gmra.mxu1 %v1212_v1 }
 0x3d1   : > { %v1318_v3 = vpop.f32.mrf.mxu1 }
 0x3d2   : > { %v1319_v4 = vadd.f32 %v1530_v44, %v1318_v3 }
 0x3d3   : > { %v1702_v5 = vpop.f32.mrf.mxu1 }
 0x3d4   : > { %1324 = vst [vmem:[%s406_s23] sm:$0xff] %v1319_v4 }
 0x3d5   : > { %v1321_v6 = vpop.f32.mrf.mxu1 }
 0x3d6   : > { %2016 = shalt.err (!%p2013_p11)
}
 0x3d7   : > { %s2017_s25 = scalar_lea.hbm %s2370_s22, 128  ;;  %s2021_s28 = scalar_lea.hbm %s2422_s9, 256 }
 0x3d8   : > { %p2018_p12 = scmp.ne.s32.totalorder %s2370_s22, %s2017_s25  ;;  %p2022_p4 = scmp.lt.s32.totalorder %s2370_s22, %s2422_s9 }
 0x3d9   : > { %p2023_p13 = scmp.lt.s32.totalorder %s2021_s28, %s2017_s25 }
 0x3da   : > { %p2019_p1 = pnand %p2018_p12, %p2447_p7 }
 0x3db   : > { %p2024_p5 = por %p2023_p13, %p2022_p4 }
 0x3dc   : > { %p2020_p3 = pneg %p2019_p1 }
 0x3de   : > { %p2025_p8 = pnand %p2024_p5, %p2020_p3 }
 0x3e0   : > { %2028 = shalt.err (!%p2025_p8)
}
 0x3e1   : > { %1725 = dma.vmem_to_hbm [thread:$0]  (%p2447_p7), %s2372_s19, 128, %s2370_s22, %s1326_s7   ;;  %v1703_v7 = vpop.f32.mrf.mxu1 }
 0x3e2 PF: > { %s1351_s17 = sand.u32 1, %s2063_s30   ;;  %p2448_p10 = scmp.ne.s32.totalorder %s2439_s14, 0 }
 0x3e3   : > { %p2449_p6 = scmp.ge.s32.totalorder %s2075_s12, 2  ;;  %s1352_s23 = scalar_lea.sflag [#allocation4], %s1351_s17 }
 0x3e5   : > { %p1745_p0 = pnand %p2449_p6, %p2448_p10 }
 0x3e7   : > { %p1746_p2 = pneg %p1745_p0 }
 0x3e9   : > { %2058 = dma.done.wait (%p1746_p2), %s1352_s23, 128  }
 0x3ea   : > { %2060 = vsyncadd (%p1746_p2), %s1352_s23, 4294967168  ;;  %p24_p9 = scmp.ge.s32.totalorder %s2238_s26, 4   ;;  %s2450_s30 = smov %s2067_s10 }
 0x3eb   : > { %s2451_s10 = smov %s2071_s11  ;;  %s2452_s11 = smov %s2249_s29 }
 0x3ec   : > { %s2453_s12 = smov %s2238_s26  ;;  %26 = sbr.rel (!%p24_p9) target bundleno = 12 (0xc), region = 117 }
 0x3f1   :  { %1357 = vsyncpa [#allocation3], 1 }
 0x3f2   :  { %1359 = vsyncpa [#allocation3 + $0x1], 1 }
 0x3f3   :  { %1360 = vsyncpa [#allocation6], 1 }
 0x3f4   :  { %1361 = vsyncpa [#allocation9], 1 }
 0x3f5   :  { %1362 = vsyncpa [#allocation4], 1 }
 0x3f6   :  { %1364 = vsyncpa [#allocation4 + $0x1], 1 }

// kernel: tpu_custom_call.1
= control target key start
LH: loop header
LB: loop body
LE: loop exit
PB: predicated region body
PF: predicated region fallthrough
CT: control target
= control target key end

     0   :  { %s2413_s0 = inlined_call_operand.hbm [shape: f32[10,784], index: 0, kind: input, shape index: {}]   ;;  %s2414_s1 = inlined_call_operand.hbm [shape: bf16[784,128], index: 1, kind: input, shape index: {}]   ;;  %s2415_s2 = inlined_call_operand.vmem [shape: f32[1,128], index: 2, kind: input, shape index: {}]   ;;  %s2416_s3 = inlined_call_operand.hbm [shape: bf16[128,128], index: 3, kind: input, shape index: {}]   ;;  %s2417_s4 = inlined_call_operand.vmem [shape: f32[1,128], index: 4, kind: input, shape index: {}]   ;;  %s2418_s5 = inlined_call_operand.hbm [shape: bf16[128,128], index: 5, kind: input, shape index: {}]   ;;  %s2419_s6 = inlined_call_operand.vmem [shape: f32[1,128], index: 6, kind: input, shape index: {}]   ;;  %s2420_s7 = inlined_call_operand.hbm [shape: bf16[128,128], index: 7, kind: input, shape index: {}]   ;;  %s2421_s8 = inlined_call_operand.vmem [shape: f32[1,128], index: 8, kind: input, shape index: {}]   ;;  %s2422_s9 = inlined_call_operand.hbm [shape: f32[10,128], index: 9, kind: output, shape index: {}]  }
   0x1   :  { %2427 = sst [smem:[#allocation16_spill]] %s2414_s1 }
   0x2   :  { %2428 = sst [smem:[#allocation17_spill]] %s2416_s3 }
   0x3   :  { %2429 = sst [smem:[#allocation18_spill]] %s2418_s5 }
   0x4   :  { %2430 = sst [smem:[#allocation19_spill]] %s2420_s7 }
   0x5   :  { %14 = vsyncpa [#allocation3], 0 }
   0x6   :  { %16 = vsyncpa [#allocation3 + $0x1], 0 }
   0x7   :  { %17 = vsyncpa [#allocation6], 0 }
   0x8   :  { %18 = vsyncpa [#allocation9], 0 }
   0x9   :  { %19 = vsyncpa [#allocation4], 0 }
   0xa   :  { %21 = vsyncpa [#allocation4 + $0x1], 0  ;;  %s2137_s30 = smov 0   ;;  %s2139_s10 = smov 0  }
   0xb   :  { %s2141_s11 = smov 0   ;;  %s2143_s12 = smov 0  }
   0xc LB: > { %s2077_s13 = smov [#allocation5]   ;;  %s2158_s15 = sadd.s32 4294967295, %s2075_s12   ;;  %s2075_s12 = sphi %s2143_s12, %s2453_s12   ;;  %s2071_s11 = sphi %s2141_s11, %s2452_s11   ;;  %s2067_s10 = sphi %s2139_s10, %s2451_s10   ;;  %s2063_s30 = sphi %s2137_s30, %s2450_s30  }
   0xd   : > { %s264_s14 = sshll.u32 %s2077_s13, 4  ;;  %p1448_p0 = scmp.ge.s32.totalorder %s2075_s12, 1  ;;  %s265_s14 = int_to_ptr.vmem [resolvable:$true] %s264_s14 }
   0xe   : > { %p2423_p1 = scmp.eq.s32.totalorder %s2158_s15, 0  ;;  %p252_p2 = scmp.lt.s32.totalorder %s2075_s12, 3 }
   0xf   : > { %s2078_s17 = smov [#allocation8]   ;;  %s2079_s20 = smov [#allocation7]  }
  0x10   : > { %p2163_p3 = pnand %p1448_p0, %p252_p2  ;;  %s296_s18 = sshll.u32 %s2078_s17, 4  ;;  %s2176_s18 = int_to_ptr.vmem [resolvable:$true] %s296_s18 }
  0x11   : > { %s280_s21 = sshll.u32 %s2079_s20, 4  ;;  %s1882_s22 = scalar_lea.vmem %s265_s14, 6272  ;;  %s2178_s21 = int_to_ptr.vmem [resolvable:$true] %s280_s21 }
  0x12   : > { %s2431_s16 = scalar_select %p2163_p3, 1, 0 }
  0x13   : > { %p1727_p5 = pneg %p2163_p3  ;;  %p1883_p8 = scmp.ne.s32.totalorder %s265_s14, %s1882_s22 }
  0x14   : > { %p1890_p11 = scmp.lt.s32.totalorder %s265_s14, %s265_s14  ;;  %p1891_p12 = scmp.lt.s32.totalorder %s1882_s22, %s1882_s22 }
  0x15   : > { %p2172_p6 = pnand %p1727_p5, %p2423_p1 }
  0x16   : > { %p1892_p13 = por %p1891_p12, %p1890_p11 }
  0x17   : > { %p1873_p7 = pneg %p2172_p6 }
  0x19   : > { %p1885_p9 = pnand %p1883_p8, %p1873_p7 }
  0x1b   : > { %p1886_p10 = pneg %p1885_p9 }
  0x1d   : > { %p1893_p0 = pnand %p1892_p13, %p1886_p10 }
  0x1f   : > { %1896 = shalt.err (!%p1893_p0)
}
  0x20   : > { %s2080_s23 = smov 64   ;;  %s2081_s24 = smov 4  }
  0x21   : > { %s2433_s1 = sld [smem:[#allocation16_spill]]  ;;  %s1908_s27 = scalar_lea.vmem %s2176_s18, 1024 }
  0x22   : > { %p1909_p2 = scmp.ne.s32.totalorder %s2176_s18, %s1908_s27  ;;  %p1916_p9 = scmp.lt.s32.totalorder %s2176_s18, %s2176_s18 }
  0x23   : > { %p1917_p10 = scmp.lt.s32.totalorder %s1908_s27, %s1908_s27 }
  0x24   : > { %p1911_p5 = pnand %p1909_p2, %p1873_p7 }
  0x25   : > { %p1918_p11 = por %p1917_p10, %p1916_p9 }
  0x26   : > { %p1912_p8 = pneg %p1911_p5 }
  0x27   : > { %1730 = dma.hbm_to_vmem [thread:$0]  (!%p2172_p6), %s2433_s1, 6272, %s265_s14, [#allocation6], %s2080_s23, %s2080_s23, %s2081_s24  }
  0x28   : > { %p1919_p12 = pnand %p1918_p11, %p1912_p8 }
  0x2a   : > { %1922 = shalt.err (!%p1919_p12)
}
  0x2b   : > { %s2434_s5 = sld [smem:[#allocation18_spill]]  ;;  %s1934_s13 = scalar_lea.vmem %s2178_s21, 1024 }
  0x2c   : > { %p1935_p13 = scmp.ne.s32.totalorder %s2178_s21, %s1934_s13  ;;  %p1942_p5 = scmp.lt.s32.totalorder %s2178_s21, %s2178_s21 }
  0x2d   : > { %p1943_p8 = scmp.lt.s32.totalorder %s1934_s13, %s1934_s13 }
  0x2e   : > { %p1937_p0 = pnand %p1935_p13, %p1873_p7 }
  0x2f   : > { %p1944_p9 = por %p1943_p8, %p1942_p5 }
  0x30   : > { %p1938_p2 = pneg %p1937_p0 }
  0x31   : > { %1736 = dma.hbm_to_vmem [thread:$0]  (!%p2172_p6), %s2434_s5, 1024, %s2176_s18, [#allocation9], %s2080_s23, %s2080_s23, %s2081_s24  }
  0x32   : > { %p1945_p10 = pnand %p1944_p9, %p1938_p2 }
  0x34   : > { %1948 = shalt.err (!%p1945_p10)
}
  0x35   : > { %s2435_s3 = sld [smem:[#allocation17_spill]]  ;;  %s2082_s18 = smov [#allocation10]  }
  0x36   : > { %s312_s20 = sshll.u32 %s2082_s18, 4  ;;  %s313_s20 = int_to_ptr.vmem [resolvable:$true] %s312_s20 }
  0x37   : > { %s1960_s22 = scalar_lea.vmem %s313_s20, 1024  ;;  %p1968_p0 = scmp.lt.s32.totalorder %s313_s20, %s313_s20 }
  0x38   : > { %p1961_p11 = scmp.ne.s32.totalorder %s313_s20, %s1960_s22  ;;  %p1969_p2 = scmp.lt.s32.totalorder %s1960_s22, %s1960_s22 }
  0x3a   : > { %p1963_p12 = pnand %p1961_p11, %p1873_p7  ;;  %p1970_p5 = por %p1969_p2, %p1968_p0 }
  0x3b   : > { %1733 = dma.hbm_to_vmem [thread:$0]  (!%p2172_p6), %s2435_s3, 1024, %s2178_s21, [#allocation6], %s2080_s23, %s2080_s23, %s2081_s24  }
  0x3c   : > { %p1964_p13 = pneg %p1963_p12 }
  0x3e   : > { %p1971_p8 = pnand %p1970_p5, %p1964_p13 }
  0x40   : > { %1974 = shalt.err (!%p1971_p8)
}
  0x41   : > { %s2436_s7 = sld [smem:[#allocation19_spill]]  ;;  %s1447_s19 = sadd.s32 4294967294, %s2075_s12  }
  0x42   : > { %s2238_s26 = sadd.s32 1, %s2075_s12   ;;  %s34_s28 = sadd.s32 1, %s2071_s11 }
  0x43   : > { %s31_s27 = ssub.s32 %s2075_s12, %s2238_s26  ;;  %p41_p9 = scmp.ne.s32.totalorder %s2071_s11, %s2067_s10 }
  0x44   : > { %p32_p7 = scmp.eq.s32.totalorder %s31_s27, 0  ;;  %p42_p10 = scmp.eq.s32.totalorder %s2075_s12, 0 }
  0x45   : > { %p47_p11 = scmp.ne.s32.totalorder %s2067_s10, %s2063_s30  ;;  %p245_p0 = scmp.eq.s32.totalorder %s1447_s19, 1 }
  0x46   : > { %s2249_s29 = scalar_select %p32_p7, %s2071_s11, %s34_s28  }
  0x47   : > { %1739 = dma.hbm_to_vmem [thread:$0]  (!%p2172_p6), %s2436_s7, 1024, %s313_s20, [#allocation9], %s2080_s23, %s2080_s23, %s2081_s24  }
  0x48   : > { %p43_p12 = por %p42_p10, %p41_p9  ;;  %p2253_p13 = por %p2423_p1, %p47_p11 }
  0x49   : > { %p239_p6 = scmp.eq.s32.totalorder %s2158_s15, 1  ;;  %p1752_p2 = scmp.lt.s32.totalorder %s2075_s12, 2 }
  0x4a   : > { %s2437_s13 = scalar_select %p2253_p13, 1, 0 }
  0x4b   : > { %s329_s23 = sand.u32 1, %s2071_s11   ;;  %p2260_p5 = por %p239_p6, %p41_p9 }
  0x4c   : > { %p2264_p8 = por %p245_p0, %p47_p11  ;;  %s1704_s17 = smul.u32 56, %s329_s23 }
  0x4d   : > { %s2438_s24 = scalar_select %p2260_p5, 1, 0 }
  0x4e   : > { %s2439_s14 = scalar_select %p2264_p8, 1, 0 }
  0x4f   : > { %s1705_s18 = smul.u32 896, %s2075_s12  ;;  %p2269_p7 = pnand %p1752_p2, %p43_p12 }
  0x50   : > { %s333_s19 = scalar_lea.vmem [#allocation2], %s1704_s17  ;;  %s330_s28 = scalar_lea.sflag [#allocation3], %s329_s23 }
  0x51   : > { %s2276_s25 = scalar_lea.hbm %s2413_s0, %s1705_s18  ;;  %s341_s27 = sshll.u32 %s333_s19, 4  ;;  %s342_s27 = int_to_ptr.vmem [resolvable:$true] %s341_s27 }
  0x52   : > { %s1975_s1 = scalar_lea.hbm %s2276_s25, 896  ;;  %p1977_p10 = pneg %p2269_p7 }
  0x53   : > { %p1976_p9 = scmp.ne.s32.totalorder %s2276_s25, %s1975_s1  ;;  %s1980_s22 = scalar_lea.hbm %s2413_s0, 1792 }
  0x54   : > { %p1981_p6 = scmp.lt.s32.totalorder %s2276_s25, %s2413_s0  ;;  %p1982_p0 = scmp.lt.s32.totalorder %s1980_s22, %s1975_s1 }
  0x55   : > { %p1978_p11 = pnand %p1977_p10, %p1976_p9 }
  0x56   : > { %p1983_p2 = por %p1982_p0, %p1981_p6 }
  0x57   : > { %p1979_p12 = pneg %p1978_p11 }
  0x59   : > { %p1984_p4 = pnand %p1983_p2, %p1979_p12 }
  0x5b   : > { %1987 = shalt.err (!%p1984_p4)
}
  0x5c   : > { %s1988_s17 = scalar_lea.vmem %s342_s27, 896  ;;  %s2083_s23 = smov [#allocation2]  }
  0x5d   : > { %p1989_p1 = scmp.ne.s32.totalorder %s342_s27, %s1988_s17  ;;  %s1993_s19 = sshll.u32 %s2083_s23, 4  ;;  %s1994_s19 = int_to_ptr.vmem [resolvable:$false] %s1993_s19 }
  0x5e   : > { %s1995_s7 = scalar_lea.vmem %s1994_s19, 1792  ;;  %p1996_p9 = scmp.lt.s32.totalorder %s342_s27, %s1994_s19 }
  0x5f   : > { %p1991_p8 = pnand %p1989_p1, %p1977_p10  ;;  %p1997_p11 = scmp.lt.s32.totalorder %s1995_s7, %s1988_s17 }
  0x61   : > { %p1992_p5 = pneg %p1991_p8  ;;  %p1998_p13 = por %p1997_p11, %p1996_p9 }
  0x63   : > { %p1999_p3 = pnand %p1998_p13, %p1992_p5 }
  0x65   : > { %2002 = shalt.err (!%p1999_p3)
}
  0x66   : > { %1743 = dma.hbm_to_vmem [thread:$0]  (!%p2269_p7), %s2276_s25, 896, %s342_s27, %s330_s28  }
  0x67   : > { %p2441_p12 = scmp.ne.s32.totalorder %s2431_s16, 0 }
  0x68   : > { %s2295_s1 = sand.u32 (!%p2441_p12), 1, %s2067_s10   ;;  %p2442_p1 = scmp.ne.s32.totalorder (!%p2441_p12), %s2437_s13, 0 }
  0x69   : > { %350 = sbr.rel (%p2441_p12) target bundleno = 994 (0x3e2), region = 56  ;;  %s353_s5 = scalar_lea.sflag (!%p2441_p12), [#allocation3], %s2295_s1 }
  0x6a   : > { %s1706_s3 = smul.u32 (!%p2441_p12), 56, %s2295_s1 }
  0x6c   : > { %s2299_s22 = scalar_lea.vmem (!%p2441_p12), [#allocation2], %s1706_s3 }
  0x6e   : > { %2046 = dma.done.wait (%p2442_p1), %s353_s5, 896  }
  0x6f   : > { %2048 = vsyncadd (%p2442_p1), %s353_s5, 4294966400  ;;  %p2443_p3 = scmp.eq.s32.totalorder %s2158_s15, 0 }
  0x71   : > { %2050 = dma.done.wait (%p2443_p3), [#allocation6], 7296   ;;  %p2444_p4 = pmov %p2443_p3 }
  0x72   : > { %p2445_p13 = pmov %p2443_p3 }
  0x73   : > { %2052 = vsyncadd (%p2444_p4), [#allocation6], 4294960000 }
  0x74   : > { %2054 = dma.done.wait (%p2445_p13), [#allocation9], 2048   ;;  %p2446_p5 = pmov %p2443_p3 }
  0x75   : > { %v1798_v0 = vld [vmem:[#allocation5 + $0x78] sm:$0xff]   ;;  %v1802_v4 = vld [vmem:[#allocation5 + $0x70] sm:$0xff]   ;;  %v1806_v8 = vld [vmem:[#allocation5 + $0x68] sm:$0xff]   ;;  %v2084_v44 = vmov 0.0   ;;  %vm2085_vm0 = vmmov 0   ;;  %vm821_vm1 = vcmask 130048  }
  0x76   : > { %2056 = vsyncadd (%p2446_p5), [#allocation9], 4294965248  ;;  %v1799_v1 = vld [vmem:[#allocation5 + $0x38] sm:$0xff]   ;;  %1543 = vmatprep.subr.bf16.mxu0 %v1798_v0  ;;  %v1803_v5 = vld [vmem:[#allocation5 + $0x30] sm:$0xff]   ;;  %s1460_s28 = sshll.u32 %s2295_s1, 3  ;;  %s1540_s17 = sshll.u32 %s2158_s15, 7 }
  0x77   : > { %v1800_v2 = vld [vmem:[#allocation5 + $0xf8] sm:$0xff]   ;;  %1544 = vmatpush3.bf16.msra.mxu0 %v1799_v1  ;;  %v1804_v6 = vld [vmem:[#allocation5 + $0xf0] sm:$0xff]   ;;  %v1807_v9 = vld [vmem:[#allocation5 + $0x28] sm:$0xff]   ;;  %s406_s23 = scalar_lea.vmem [#allocation11], %s1460_s28  ;;  %s1326_s7 = scalar_lea.sflag [#allocation4], %s2295_s1 }
  0x78   : > { %v1801_v3 = vld [vmem:[#allocation5 + $0xb8] sm:$0xff]   ;;  %1565 = vmatprep.subr.bf16.mxu1 %v1800_v2  ;;  %1545 = vmatprep.subr.bf16.mxu0 %v1802_v4  ;;  %v1805_v7 = vld [vmem:[#allocation5 + $0xb0] sm:$0xff]   ;;  %v1808_v10 = vld [vmem:[#allocation5 + $0xe8] sm:$0xff]   ;;  %s1339_s19 = sshll.u32 %s406_s23, 4  ;;  %p2447_p7 = scmp.ne.s32.totalorder %s2438_s24, 0  ;;  %s2372_s19 = int_to_ptr.vmem [resolvable:$true] %s1339_s19 }
  0x79   : > { %1566 = vmatpush3.bf16.msra.mxu1 %v1801_v3  ;;  %v1809_v11 = vld [vmem:[#allocation5 + $0xa8] sm:$0xff]   ;;  %v1810_v12 = vld [vmem:[#allocation5 + $0x60] sm:$0xff]   ;;  %v1814_v16 = vld [vmem:[#allocation5 + $0x58] sm:$0xff]   ;;  %s2003_s16 = scalar_lea.vmem %s2372_s19, 128  ;;  %s2086_s15 = smov [#allocation11]  }
  0x7a   : > { %1567 = vmatprep.subr.bf16.mxu1 %v1804_v6  ;;  %v1811_v13 = vld [vmem:[#allocation5 + $0x20] sm:$0xff]   ;;  %v1815_v17 = vld [vmem:[#allocation5 + $0x18] sm:$0xff]   ;;  %v1818_v20 = vld [vmem:[#allocation5 + $0x50] sm:$0xff]   ;;  %p2004_p8 = scmp.ne.s32.totalorder %s2372_s19, %s2003_s16  ;;  %s2007_s13 = sshll.u32 %s2086_s15, 4  ;;  %s2008_s13 = int_to_ptr.vmem [resolvable:$false] %s2007_s13 }
  0x7b   : > { %1546 = vmatpush3.bf16.msra.mxu0 %v1803_v5  ;;  %v1812_v14 = vld [vmem:[#allocation5 + $0xe0] sm:$0xff]   ;;  %v1816_v18 = vld [vmem:[#allocation5 + $0xd8] sm:$0xff]   ;;  %v1819_v21 = vld [vmem:[#allocation5 + $0x10] sm:$0xff]   ;;  %s2009_s20 = scalar_lea.vmem %s2008_s13, 256  ;;  %p2010_p0 = scmp.lt.s32.totalorder %s2372_s19, %s2008_s13 }
  0x7c   : > { %1547 = vmatprep.subr.bf16.mxu0 %v1806_v8  ;;  %v1813_v15 = vld [vmem:[#allocation5 + $0xa0] sm:$0xff]   ;;  %v1817_v19 = vld [vmem:[#allocation5 + $0x98] sm:$0xff]   ;;  %v1820_v22 = vld [vmem:[#allocation5 + $0xd0] sm:$0xff]   ;;  %p2005_p10 = pnand %p2004_p8, %p2447_p7  ;;  %p2011_p2 = scmp.lt.s32.totalorder %s2009_s20, %s2003_s16 }
  0x7d   : > { %1568 = vmatpush3.bf16.msra.mxu1 %v1805_v7  ;;  %v1821_v23 = vld [vmem:[#allocation5 + $0x90] sm:$0xff]   ;;  %v1822_v24 = vld [vmem:[#allocation5 + $0x48] sm:$0xff]   ;;  %v1826_v28 = vld [vmem:[#allocation5 + $0x40] sm:$0xff]  }
  0x7e   : > { %1569 = vmatprep.subr.bf16.mxu1 %v1808_v10  ;;  %v1823_v25 = vld [vmem:[#allocation5 + $0x8] sm:$0xff]   ;;  %v1827_v29 = vld [vmem:[#allocation5] sm:$0xff]   ;;  %v409_v31 = vld [vmem:[%s2299_s22 + $0x8] sm:$0xff]  ;;  %p2006_p6 = pneg %p2005_p10  ;;  %p2012_p9 = por %p2011_p2, %p2010_p0 }
  0x7f   : > { %1548 = vmatpush3.bf16.msra.mxu0 %v1807_v9  ;;  %v1824_v26 = vld [vmem:[#allocation5 + $0xc8] sm:$0xff]   ;;  %v1828_v30 = vld [vmem:[#allocation5 + $0xc0] sm:$0xff]   ;;  %v416_v32 = vpack.c.bf16 %v409_v31, %v409_v31  ;;  %v1830_v36 = vld [vmem:[#allocation5 + $0x178] sm:$0xff]  }
  0x80   : > { %1549 = vmatprep.subr.bf16.mxu0 %v1810_v12  ;;  %v1825_v27 = vld [vmem:[#allocation5 + $0x88] sm:$0xff]   ;;  %v1829_v33 = vld [vmem:[#allocation5 + $0x80] sm:$0xff]   ;;  %v1831_v39 = vld [vmem:[#allocation5 + $0x138] sm:$0xff]   ;;  %p2013_p11 = pnand %p2012_p9, %p2006_p6 }
  0x81   : > { %1570 = vmatpush3.bf16.msra.mxu1 %v1809_v11  ;;  %v408_v34 = vld [vmem:[%s2299_s22] sm:$0xff]  ;;  %v411_v37 = vld [vmem:[%s2299_s22 + $0x18] sm:$0xff]  ;;  %857 = vmatprep.mubr.bf16.mxu0 %v416_v32  ;;  %v410_v40 = vld [vmem:[%s2299_s22 + $0x10] sm:$0xff] }
  0x82   : > { %1571 = vmatprep.subr.bf16.mxu1 %v1812_v14  ;;  %v415_v35 = vpack.c.bf16 %v408_v34, %v408_v34  ;;  %v418_v38 = vpack.c.bf16 %v411_v37, %v411_v37  ;;  %v417_v41 = vpack.c.bf16 %v410_v40, %v410_v40  ;;  %v1832_v42 = vld [vmem:[#allocation5 + $0x170] sm:$0xff]   ;;  %v1834_v45 = vld [vmem:[#allocation5 + $0x168] sm:$0xff]   ;;  %v1836_v47 = vld [vmem:[#allocation5 + $0x160] sm:$0xff]  }
  0x83   : > { %1550 = vmatpush3.bf16.msra.mxu0 %v1811_v13  ;;  %v1833_v43 = vld [vmem:[#allocation5 + $0x130] sm:$0xff]   ;;  %v1835_v46 = vld [vmem:[#allocation5 + $0x128] sm:$0xff]   ;;  %v1837_v48 = vld [vmem:[#allocation5 + $0x120] sm:$0xff]  }
  0x84   : > { %1551 = vmatprep.subr.bf16.mxu0 %v1814_v16  ;;  %897 = vmatprep.mubr.bf16.mxu1 %v418_v38  ;;  %v1838_v49 = vld [vmem:[#allocation5 + $0x158] sm:$0xff]   ;;  %v1840_v51 = vld [vmem:[#allocation5 + $0x150] sm:$0xff]   ;;  %v1846_v53 = vld [vmem:[#allocation5 + $0x180] sm:$0xff]  }
  0x85   : > { %1572 = vmatpush3.bf16.msra.mxu1 %v1813_v15  ;;  %v1839_v50 = vld [vmem:[#allocation5 + $0x118] sm:$0xff]   ;;  %v1841_v52 = vld [vmem:[#allocation5 + $0x110] sm:$0xff]   ;;  %v1842_v55 = vld [vmem:[#allocation5 + $0x148] sm:$0xff]  }
  0x86   : > { %1573 = vmatprep.subr.bf16.mxu1 %v1816_v18  ;;  %v413_v54 = vld [vmem:[%s2299_s22 + $0x28] sm:$0xff]  ;;  %v414_v57 = vld [vmem:[%s2299_s22 + $0x30] sm:$0xff]  ;;  %v1843_v59 = vld [vmem:[#allocation5 + $0x108] sm:$0xff]  }
  0x87   : > { %1552 = vmatpush3.bf16.msra.mxu0 %v1815_v17  ;;  %v420_v56 = vpack.c.bf16 %v413_v54, %v413_v54  ;;  %v421_v58 = vpack.c.bf16 %v414_v57, %v414_v57  ;;  %v1844_v60 = vld [vmem:[#allocation5 + $0x140] sm:$0xff]   ;;  %v412_v62 = vld [vmem:[%s2299_s22 + $0x20] sm:$0xff]  ;;  %v1848_v1 = vld [vmem:[#allocation7 + $0x30] sm:$0xff]   ;;  %s2370_s22 = scalar_lea.hbm %s2422_s9, %s1540_s17 }
  0x88   : > { %1553 = vmatprep.subr.bf16.mxu0 %v1818_v20  ;;  %v1845_v61 = vld [vmem:[#allocation5 + $0x100] sm:$0xff]   ;;  %v419_v63 = vpack.c.bf16 %v412_v62, %v412_v62  ;;  %v1849_v2 = vld [vmem:[#allocation7 + $0x28] sm:$0xff]   ;;  %v1850_v3 = vld [vmem:[#allocation7 + $0x20] sm:$0xff]  }
  0x89   : > { %1574 = vmatpush3.bf16.msra.mxu1 %v1817_v19  ;;  %v1847_v0 = vld [vmem:[#allocation7 + $0x38] sm:$0xff]   ;;  %v1852_v5 = vld [vmem:[#allocation7 + $0x10] sm:$0xff]   ;;  %v1853_v6 = vld [vmem:[#allocation7 + $0x8] sm:$0xff]  }
  0x8a   : > { %1575 = vmatprep.subr.bf16.mxu1 %v1820_v22  ;;  %v1851_v4 = vld [vmem:[#allocation7 + $0x18] sm:$0xff]   ;;  %v1854_v7 = vld [vmem:[#allocation7] sm:$0xff]   ;;  %v1856_v9 = vld [vmem:[#allocation8 + $0x30] sm:$0xff]  }
  0x8b   : > { %1554 = vmatpush3.bf16.msra.mxu0 %v1819_v21  ;;  %v1855_v8 = vld [vmem:[#allocation8 + $0x38] sm:$0xff]   ;;  %v1857_v10 = vld [vmem:[#allocation8 + $0x28] sm:$0xff]   ;;  %v1858_v11 = vld [vmem:[#allocation8 + $0x20] sm:$0xff]  }
  0x8c   : > { %1555 = vmatprep.subr.bf16.mxu0 %v1822_v24  ;;  %v1859_v12 = vld [vmem:[#allocation8 + $0x18] sm:$0xff]   ;;  %v1860_v13 = vld [vmem:[#allocation8 + $0x10] sm:$0xff]   ;;  %v1861_v40 = vld [vmem:[#allocation8 + $0x8] sm:$0xff]  }
  0x8d   : > { %1576 = vmatpush3.bf16.msra.mxu1 %v1821_v23  ;;  %v1869_v57 = vld [vmem:[#allocation10 + $0x8] sm:$0xff]  }
  0x8e   : > { %1577 = vmatprep.subr.bf16.mxu1 %v1824_v26 }
  0x8f   : > { %1556 = vmatpush3.bf16.msra.mxu0 %v1823_v25 }
  0x90   : > { %1557 = vmatprep.subr.bf16.mxu0 %v1826_v28 }
  0x91   : > { %1578 = vmatpush3.bf16.msra.mxu1 %v1825_v27  ;;  %v1461_v27 = vld [vmem:[%s2415_s2] ss:$0 sm:$0xff] }
  0x92   : > { %1579 = vmatprep.subr.bf16.mxu1 %v1828_v30 }
  0x93   : > { %1558 = vmatpush3.bf16.msra.mxu0 %v1827_v29 }
  0x94   : > { %1587 = vmatprep.subr.bf16.mxu0 %v1830_v36 }
  0x95   : > { %1580 = vmatpush3.bf16.msra.mxu1 %v1829_v33 }
  0x96   : > { %858 = vmatmul.mubr.bf16.vlgmr.msra.gmra.mxu0 %v415_v35  ;;  %1638 = vmatprep.subr.bf16.mxu1 %v2084_v44 }
  0x97   : > { %1588 = vmatpush3.bf16.msra.mxu0 %v1831_v39  ;;  %937 = vmatprep.mubr.bf16.mxu0 %v420_v56 }
  0x98   : > { %898 = vmatmul.mubr.bf16.vlgmr.msra.gmra.mxu1 %v417_v41  ;;  %1589 = vmatprep.subr.bf16.mxu0 %v1832_v42  ;;  %v1862_v41 = vld [vmem:[#allocation8] sm:$0xff]   ;;  %v1863_v42 = vld [vmem:[#allocation10 + $0x38] sm:$0xff]  }
  0x99   : > { %1640 = vmatprep.mubr.msk.bf16.mxu1 %vm2085_vm0, %v2084_v44  ;;  %1639 = vmatpush3.bf16.msra.mxu1 %v1846_v53 }
  0x9a   : > { %1644 = vmatprep.subr.bf16.mxu1 %v2084_v44 }
  0x9b   : > { %1590 = vmatpush3.bf16.msra.mxu0 %v1833_v43  ;;  %v1864_v43 = vld [vmem:[#allocation10 + $0x30] sm:$0xff]  }
  0x9c   : > { %1591 = vmatprep.subr.bf16.mxu0 %v1834_v45  ;;  %v1865_v45 = vld [vmem:[#allocation10 + $0x28] sm:$0xff]  }
  0x9f   : > { %1592 = vmatpush3.bf16.msra.mxu0 %v1835_v46  ;;  %v1866_v46 = vld [vmem:[#allocation10 + $0x20] sm:$0xff]  }
  0xa0   : > { %1593 = vmatprep.subr.bf16.mxu0 %v1836_v47  ;;  %1641 = vmatmul.mubr.msk.bf16.vlgmr.msra.gmra.mxu1 %vm821_vm1, %v421_v58  ;;  %v1867_v47 = vld [vmem:[#allocation10 + $0x18] sm:$0xff]   ;;  %v1870_v58 = vld [vmem:[#allocation10] sm:$0xff]  }
  0xa1   : > { %1660 = vmatprep.mubr.msk.bf16.mxu1 %vm2085_vm0, %v2084_v44  ;;  %1645 = vmatpush3.bf16.msra.mxu1 %v1847_v0 }
  0xa2   : > { %1646 = vmatprep.subr.bf16.mxu1 %v2084_v44 }
  0xa3   : > { %1594 = vmatpush3.bf16.msra.mxu0 %v1837_v48  ;;  %v1868_v48 = vld [vmem:[#allocation10 + $0x10] sm:$0xff]  }
  0xa4   : > { %1595 = vmatprep.subr.bf16.mxu0 %v1838_v49  ;;  %v1512_v49 = vld [vmem:[%s2417_s4] ss:$0 sm:$0xff] }
  0xa5   : > { %1647 = vmatpush3.bf16.msra.mxu1 %v1848_v1 }
  0xa6   : > { %1648 = vmatprep.subr.bf16.mxu1 %v2084_v44 }
  0xa7   : > { %1596 = vmatpush3.bf16.msra.mxu0 %v1839_v50 }
  0xa8   : > { %1597 = vmatprep.subr.bf16.mxu0 %v1840_v51 }
  0xa9   : > { %1649 = vmatpush3.bf16.msra.mxu1 %v1849_v2 }
  0xaa   : > { %1650 = vmatprep.subr.bf16.mxu1 %v2084_v44 }
  0xab   : > { %1598 = vmatpush3.bf16.msra.mxu0 %v1841_v52 }
  0xac   : > { %1599 = vmatprep.subr.bf16.mxu0 %v1842_v55 }
  0xad   : > { %1651 = vmatpush3.bf16.msra.mxu1 %v1850_v3 }
  0xae   : > { %1652 = vmatprep.subr.bf16.mxu1 %v2084_v44 }
  0xaf   : > { %1600 = vmatpush3.bf16.msra.mxu0 %v1843_v59  ;;  %v1521_v59 = vld [vmem:[%s2419_s6] ss:$0 sm:$0xff] }
  0xb0   : > { %1601 = vmatprep.subr.bf16.mxu0 %v1844_v60 }
  0xb1   : > { %1653 = vmatpush3.bf16.msra.mxu1 %v1851_v4 }
  0xb2   : > { %1654 = vmatprep.subr.bf16.mxu1 %v2084_v44 }
  0xb3   : > { %1602 = vmatpush3.bf16.msra.mxu0 %v1845_v61 }
  0xb4   : > { %1664 = vmatprep.subr.bf16.mxu0 %v2084_v44 }
  0xb5   : > { %1655 = vmatpush3.bf16.msra.mxu1 %v1852_v5 }
  0xb6   : > { %938 = vmatmul.mubr.bf16.vlgmr.msra.gmra.mxu0 %v419_v63  ;;  %1656 = vmatprep.subr.bf16.mxu1 %v2084_v44 }
  0xb7   : > { %1680 = vmatprep.mubr.msk.bf16.mxu0 %vm2085_vm0, %v2084_v44  ;;  %1665 = vmatpush3.bf16.msra.mxu0 %v1855_v8 }
  0xb8   : > { %1666 = vmatprep.subr.bf16.mxu0 %v2084_v44 }
  0xb9   : > { %1657 = vmatpush3.bf16.msra.mxu1 %v1853_v6 }
  0xba   : > { %1658 = vmatprep.subr.bf16.mxu1 %v2084_v44 }
  0xbb   : > { %1667 = vmatpush3.bf16.msra.mxu0 %v1856_v9 }
  0xbc   : > { %1668 = vmatprep.subr.bf16.mxu0 %v2084_v44 }
  0xbd   : > { %1659 = vmatpush3.bf16.msra.mxu1 %v1854_v7 }
  0xbe   : > { %1684 = vmatprep.subr.bf16.mxu1 %v2084_v44 }
  0xbf   : > { %1669 = vmatpush3.bf16.msra.mxu0 %v1857_v10 }
  0xc0   : > { %1670 = vmatprep.subr.bf16.mxu0 %v2084_v44 }
  0xc3   : > { %1671 = vmatpush3.bf16.msra.mxu0 %v1858_v11 }
  0xc4   : > { %1672 = vmatprep.subr.bf16.mxu0 %v2084_v44 }
  0xc7   : > { %1673 = vmatpush3.bf16.msra.mxu0 %v1859_v12 }
  0xc8   : > { %1674 = vmatprep.subr.bf16.mxu0 %v2084_v44 }
  0xcb   : > { %1675 = vmatpush3.bf16.msra.mxu0 %v1860_v13 }
  0xcc   : > { %1676 = vmatprep.subr.bf16.mxu0 %v2084_v44 }
  0xcf   : > { %1677 = vmatpush3.bf16.msra.mxu0 %v1861_v40 }
  0xd0   : > { %1678 = vmatprep.subr.bf16.mxu0 %v2084_v44 }
  0xd3   : > { %1679 = vmatpush3.bf16.msra.mxu0 %v1862_v41 }
 0x156   : > { %v1559_v14 = vpop.f32.mrf.mxu0 }
 0x158   : > { %v1560_v15 = vpop.f32.mrf.mxu0  ;;  %v1581_v16 = vpop.f32.mrf.mxu1 }
 0x159   : > { %v1561_v26 = vadd.f32 %v1560_v15, %v1559_v14 }
 0x15a   : > { %v1562_v17 = vpop.f32.mrf.mxu0  ;;  %v1582_v18 = vpop.f32.mrf.mxu1 }
 0x15b   : > { %v860_v28 = vadd.f32 %v1561_v26, %v1461_v27  ;;  %v1583_v29 = vadd.f32 %v1582_v18, %v1581_v16 }
 0x15c   : > { %v1563_v19 = vpop.f32.mrf.mxu0  ;;  %v1584_v20 = vpop.f32.mrf.mxu1 }
 0x15d   : > { %v900_v32 = vadd.f32 %v1583_v29, %v860_v28 }
 0x15e   : > { %v1585_v21 = vpop.f32.mrf.mxu1 }
 0x160   : > { %v979_v22 = vpop.f32.mrf.mxu1 }
 0x162   : > { %v1642_v23 = vpop.f32.mrf.mxu1 }
 0x164   : > { %v982_v24 = vpop.f32.mrf.mxu1 }
 0x166   : > { %v1643_v25 = vpop.f32.mrf.mxu1 }
 0x176   : > { %v1603_v30 = vpop.f32.mrf.mxu0 }
 0x178   : > { %v1604_v31 = vpop.f32.mrf.mxu0 }
 0x179   : > { %v1605_v33 = vadd.f32 %v1604_v31, %v1603_v30 }
 0x17a   : > { %v1606_v34 = vpop.f32.mrf.mxu0 }
 0x17b   : > { %v940_v35 = vadd.f32 %v1605_v33, %v900_v32 }
 0x17c   : > { %v1607_v36 = vpop.f32.mrf.mxu0 }
 0x17d   : > { %v980_v37 = vadd.f32 %v979_v22, %v940_v35 }
 0x17f   : > { %v985_v38 = vmax.f32 %v980_v37, 0.0 }
 0x181   : > { %v986_v39 = vpack.c.bf16 %v985_v38, %v985_v38 }
 0x183   : > { %1661 = vmatmul.mubr.bf16.vlgmr.msra.gmra.mxu1 %v986_v39 }
 0x184   : > { %1700 = vmatprep.mubr.msk.bf16.mxu1 %vm2085_vm0, %v2084_v44  ;;  %1685 = vmatpush3.bf16.msra.mxu1 %v1863_v42 }
 0x185   : > { %1686 = vmatprep.subr.bf16.mxu1 %v2084_v44 }
 0x188   : > { %1687 = vmatpush3.bf16.msra.mxu1 %v1864_v43 }
 0x189   : > { %1688 = vmatprep.subr.bf16.mxu1 %v2084_v44 }
 0x18c   : > { %1689 = vmatpush3.bf16.msra.mxu1 %v1865_v45 }
 0x18d   : > { %1690 = vmatprep.subr.bf16.mxu1 %v2084_v44 }
 0x190   : > { %1691 = vmatpush3.bf16.msra.mxu1 %v1866_v46 }
 0x191   : > { %1692 = vmatprep.subr.bf16.mxu1 %v2084_v44 }
 0x194   : > { %1693 = vmatpush3.bf16.msra.mxu1 %v1867_v47 }
 0x195   : > { %1694 = vmatprep.subr.bf16.mxu1 %v2084_v44 }
 0x198   : > { %1695 = vmatpush3.bf16.msra.mxu1 %v1868_v48 }
 0x199   : > { %1696 = vmatprep.subr.bf16.mxu1 %v2084_v44 }
 0x19c   : > { %1697 = vmatpush3.bf16.msra.mxu1 %v1869_v57 }
 0x19d   : > { %1698 = vmatprep.subr.bf16.mxu1 %v2084_v44  ;;  %v1530_v44 = vld [vmem:[%s2421_s8] ss:$0 sm:$0xff] }
 0x1a0   : > { %1699 = vmatpush3.bf16.msra.mxu1 %v1870_v58 }
 0x243   : > { %v1092_v50 = vpop.f32.mrf.mxu1 }
 0x244   : > { %v1093_v51 = vadd.f32 %v1512_v49, %v1092_v50 }
 0x245   : > { %v1662_v52 = vpop.f32.mrf.mxu1 }
 0x246   : > { %v1098_v53 = vmax.f32 %v1093_v51, 0.0 }
 0x247   : > { %v1095_v54 = vpop.f32.mrf.mxu1 }
 0x248   : > { %v1099_v55 = vpack.c.bf16 %v1098_v53, %v1098_v53 }
 0x249   : > { %v1663_v56 = vpop.f32.mrf.mxu1 }
 0x24a   : > { %1681 = vmatmul.mubr.bf16.vlgmr.msra.gmra.mxu0 %v1099_v55 }
 0x30a   : > { %v1205_v60 = vpop.f32.mrf.mxu0 }
 0x30b   : > { %v1206_v61 = vadd.f32 %v1521_v59, %v1205_v60 }
 0x30c   : > { %v1682_v62 = vpop.f32.mrf.mxu0 }
 0x30d   : > { %v1211_v63 = vmax.f32 %v1206_v61, 0.0 }
 0x30e   : > { %v1208_v0 = vpop.f32.mrf.mxu0 }
 0x30f   : > { %v1212_v1 = vpack.c.bf16 %v1211_v63, %v1211_v63 }
 0x310   : > { %v1683_v2 = vpop.f32.mrf.mxu0 }
 0x311   : > { %1701 = vmatmul.mubr.bf16.vlgmr.msra.gmra.mxu1 %v1212_v1 }
 0x3d1   : > { %v1318_v3 = vpop.f32.mrf.mxu1 }
 0x3d2   : > { %v1319_v4 = vadd.f32 %v1530_v44, %v1318_v3 }
 0x3d3   : > { %v1702_v5 = vpop.f32.mrf.mxu1 }
 0x3d4   : > { %1324 = vst [vmem:[%s406_s23] sm:$0xff] %v1319_v4 }
 0x3d5   : > { %v1321_v6 = vpop.f32.mrf.mxu1 }
 0x3d6   : > { %2016 = shalt.err (!%p2013_p11)
}
 0x3d7   : > { %s2017_s25 = scalar_lea.hbm %s2370_s22, 128  ;;  %s2021_s28 = scalar_lea.hbm %s2422_s9, 256 }
 0x3d8   : > { %p2018_p12 = scmp.ne.s32.totalorder %s2370_s22, %s2017_s25  ;;  %p2022_p4 = scmp.lt.s32.totalorder %s2370_s22, %s2422_s9 }
 0x3d9   : > { %p2023_p13 = scmp.lt.s32.totalorder %s2021_s28, %s2017_s25 }
 0x3da   : > { %p2019_p1 = pnand %p2018_p12, %p2447_p7 }
 0x3db   : > { %p2024_p5 = por %p2023_p13, %p2022_p4 }
 0x3dc   : > { %p2020_p3 = pneg %p2019_p1 }
 0x3de   : > { %p2025_p8 = pnand %p2024_p5, %p2020_p3 }
 0x3e0   : > { %2028 = shalt.err (!%p2025_p8)
}
 0x3e1   : > { %1725 = dma.vmem_to_hbm [thread:$0]  (%p2447_p7), %s2372_s19, 128, %s2370_s22, %s1326_s7   ;;  %v1703_v7 = vpop.f32.mrf.mxu1 }
 0x3e2 PF: > { %s1351_s17 = sand.u32 1, %s2063_s30   ;;  %p2448_p10 = scmp.ne.s32.totalorder %s2439_s14, 0 }
 0x3e3   : > { %p2449_p6 = scmp.ge.s32.totalorder %s2075_s12, 2  ;;  %s1352_s23 = scalar_lea.sflag [#allocation4], %s1351_s17 }
 0x3e5   : > { %p1745_p0 = pnand %p2449_p6, %p2448_p10 }
 0x3e7   : > { %p1746_p2 = pneg %p1745_p0 }
 0x3e9   : > { %2058 = dma.done.wait (%p1746_p2), %s1352_s23, 128  }
 0x3ea   : > { %2060 = vsyncadd (%p1746_p2), %s1352_s23, 4294967168  ;;  %p24_p9 = scmp.ge.s32.totalorder %s2238_s26, 4   ;;  %s2450_s30 = smov %s2067_s10 }
 0x3eb   : > { %s2451_s10 = smov %s2071_s11  ;;  %s2452_s11 = smov %s2249_s29 }
 0x3ec   : > { %s2453_s12 = smov %s2238_s26  ;;  %26 = sbr.rel (!%p24_p9) target bundleno = 12 (0xc), region = 117 }
 0x3f1   :  { %1357 = vsyncpa [#allocation3], 1 }
 0x3f2   :  { %1359 = vsyncpa [#allocation3 + $0x1], 1 }
 0x3f3   :  { %1360 = vsyncpa [#allocation6], 1 }
 0x3f4   :  { %1361 = vsyncpa [#allocation9], 1 }
 0x3f5   :  { %1362 = vsyncpa [#allocation4], 1 }
 0x3f6   :  { %1364 = vsyncpa [#allocation4 + $0x1], 1 }

</bundles_post_ra>
